<compile_context>
chip_gen: v7x
topology: tpu7x:2x2x1
jax: 0.10.0
libtpu: 0.0.40
codegen_flags: <defaults>
</compile_context>

<pallas_src>
import jax
import jax.numpy as jnp
from jax.experimental import pallas as pl

# --- module hyper-parameters (small, consistent with __init__ defaults) -------
HIDDEN_DIM = 32          # hidden_dim
TRA_DIM = 8              # tra_dim
NUM_STATES = 4           # num_states (>1 -> full TRA path)
HIST_LOSS_SEQ_LEN = 16   # hist_loss_seq_len (small)
HORIZON = 4              # horizon (small)
TAU = 1.0
GAMMA = 0.01
RHO = 0.999
EPSILON = 0.01
SINKHORN_ITERS = 3

_T, _K, _H = TRA_DIM, NUM_STATES, HIDDEN_DIM
_G = 4 * _T                         # 32: LSTM gate width == slab lane width
_S = HIST_LOSS_SEQ_LEN - HORIZON    # 12 router steps

# --- parameter-slab row layout (all rows are _G = 32 lanes wide, f32) ---------
ROW_WHH = 0                         # [ 0:8 )  W_hh                 (T, 4T)
ROW_WIH = ROW_WHH + _T              # [ 8:12)  W_ih                 (K, 4T)
ROW_BLSTM = ROW_WIH + _K            # [12]     b_ih + b_hh          (1, 4T)
ROW_BXCAT = ROW_BLSTM + 1           # [13]     [b_pred | b_fc]      (1, 2K) zero-padded
ROW_WXCAT = 16                      # [16:48)  [W_pred | W_fc_x]    (H, 2K) zero-padded
ROW_WFCH = ROW_WXCAT + _H           # [48:56)  W_fc_h               (T, K)  zero-padded
SLAB_ROWS = ROW_WFCH + _T           # 56

# --- packed-output column layout (width OUT_W, f32) ---------------------------
OUT_W = 16
COL_FINAL = 0
COL_PREDS = 1
COL_PROBS = COL_PREDS + _K          # 5
COL_LOSS = COL_PROBS + _K           # 9


def _tra_kernel(x_ref, hist_ref, y_ref, gumbel_ref, slab_ref, out_ref):
    B = x_ref.shape[0]
    f32 = jnp.float32
    bf16 = jnp.bfloat16

    # ---- parameter slab: one DMA, static in-kernel slices --------------------
    w_hh = slab_ref[ROW_WHH:ROW_WHH + _T, :].astype(bf16)        # (T, 4T)
    w_ih = slab_ref[ROW_WIH:ROW_WIH + _K, :].astype(bf16)        # (K, 4T)
    b_lstm = slab_ref[ROW_BLSTM:ROW_BLSTM + 1, :]                # (1, 4T)  f32
    b_xcat = slab_ref[ROW_BXCAT:ROW_BXCAT + 1, :]                # (1, 32), cols >= 2K are 0
    w_xcat = slab_ref[ROW_WXCAT:ROW_WXCAT + _H, :].astype(bf16)  # (H, 32), cols >= 2K are 0
    w_fch = slab_ref[ROW_WFCH:ROW_WFCH + _T, :].astype(bf16)     # (T, 32), cols >= K are 0

    x = x_ref[...]                                               # (B, H)

    # ---- fused x projections: [predictors | fc_x] in one MXU pass over H -----
    xz = jnp.dot(x.astype(bf16), w_xcat, preferred_element_type=f32) + b_xcat  # (B, 32)
    preds = xz[:, 0:_K]                                          # predictors(x)
    fc_x = xz[:, _K:2 * _K]                                      # x-half of fc (+ b_fc)

    # ---- LSTM input projection, computed inside the kernel, off the serial chain
    hist = hist_ref[...]                                         # (B, L*K), col = t*K + k
    hp = []
    for t in range(_S):                                          # only t < S => hist_loss[:, :-horizon]
        xt = hist[:, t * _K:(t + 1) * _K].astype(bf16)           # (B, K)
        hp.append(jnp.dot(xt, w_ih, preferred_element_type=f32) + b_lstm)  # (B, 4T)

    # ---- single-layer LSTM recurrence (the serial critical path) -------------
    # TODO(synk): explicit MXU-resident RHS (pltpu.matmul_push_rhs/acc_lhs) skipped
    #             for these tiny, non-tile-sized operands; see header note.
    h = jnp.zeros((B, _T), f32)
    c = jnp.zeros((B, _T), f32)
    for t in range(_S):                                          # short fixed trip count -> unrolled
        gates = hp[t] + jnp.dot(h.astype(bf16), w_hh, preferred_element_type=f32)  # (B, 4T)
        sig = jax.nn.sigmoid(gates)                              # 1 EUP push, full tile
        th = jnp.tanh(gates)                                     # 1 EUP push, full tile
        i_g = sig[:, 0 * _T:1 * _T]
        f_g = sig[:, 1 * _T:2 * _T]
        g_g = th[:, 2 * _T:3 * _T]
        o_g = sig[:, 3 * _T:4 * _T]
        c = f_g * c + i_g * g_g
        h = o_g * jnp.tanh(c)
    tpe = h                                                      # router_out[:, -1]

    # ---- fc on cat([x, tpe]) == fc_x + tpe @ W_fc_h ---------------------------
    logits = fc_x + jnp.dot(tpe.astype(bf16), w_fch, preferred_element_type=f32)[:, 0:_K]

    # ---- gumbel softmax (soft, temperature tau) -------------------------------
    z = (logits + gumbel_ref[...]) * (1.0 / TAU)
    z = z - jnp.max(z, axis=-1, keepdims=True)
    ez = jnp.exp(z)
    probs = ez * pl.reciprocal(jnp.sum(ez, axis=-1, keepdims=True), approx=True)

    # ---- training-mode final prediction ---------------------------------------
    final = jnp.sum(preds * probs, axis=-1, keepdims=True)       # (B, 1)

    # ---- loss_opt_transport (sinkhorn OT penalty) ------------------------------
    se = (preds - y_ref[...]) ** 2                               # (B, K)
    se = se - jnp.min(se, axis=-1, keepdims=True) + 1e-6
    Q = -se
    # shoot_infs: replace non-finite entries by max finite value (identity if all finite)
    finite = jnp.isfinite(Q)
    mfin = jnp.max(jnp.where(finite, Q, -jnp.inf), keepdims=True)
    Q = jnp.where(finite, Q, mfin)
    Q = jnp.exp(Q * (1.0 / EPSILON))
    for _ in range(SINKHORN_ITERS):
        # Q >= 0, so clamping the denominator reproduces nan_to_num(0) behaviour
        # for all-zero rows/cols without the inf blow-up.
        col = jnp.maximum(jnp.sum(Q, axis=0, keepdims=True), 1e-30)
        Q = Q * pl.reciprocal(col, approx=True)
        row = jnp.maximum(jnp.sum(Q, axis=1, keepdims=True), 1e-30)
        Q = Q * pl.reciprocal(row, approx=True)
    row_reg = jnp.sum(jnp.log(probs + 1e-4) * Q, axis=-1, keepdims=True)   # (B, 1)
    reg = jnp.sum(row_reg, axis=0, keepdims=True) * (1.0 / B)              # (1, 1)
    lamb = GAMMA * (RHO ** 0)                                    # first global step
    loss = (-lamb) * reg                                         # (1, 1)

    # ---- one packed lane-contiguous output block -> single output DMA ---------
    out_ref[...] = jnp.zeros((B, OUT_W), f32)
    out_ref[:, COL_FINAL:COL_FINAL + 1] = final
    out_ref[:, COL_PREDS:COL_PREDS + _K] = preds
    out_ref[:, COL_PROBS:COL_PROBS + _K] = probs
    out_ref[:, COL_LOSS:COL_LOSS + 1] = jnp.broadcast_to(loss, (B, 1))


@jax.jit
def tra_forward(x, hist_loss, y, gumbel, slab):
    B = x.shape[0]
    # Contiguous reshape is a free view (bitcast); the [:, :-horizon] slice of the
    # original is applied inside the kernel by only reading columns t < S.
    hist2d = hist_loss.reshape(B, -1)                            # (B, L*K)

    out = pl.pallas_call(
        _tra_kernel,
        out_shape=jax.ShapeDtypeStruct((B, OUT_W), jnp.float32),
    )(x, hist2d, y, gumbel, slab)

    final_pred = out[:, COL_FINAL:COL_FINAL + 1]
    preds = out[:, COL_PREDS:COL_PREDS + _K]
    probs = out[:, COL_PROBS:COL_PROBS + _K]
    loss = out[0:1, COL_LOSS:COL_LOSS + 1]
    return final_pred, {'loss_opt_transport': loss, 'hidden': preds,
                        'preds': preds, 'probs': probs}


def init_params(key):
    """Deterministic synthetic parameters packed into ONE (SLAB_ROWS, 4T) f32 slab.

    Linear / LSTM weights are stored as (in_features, out_features), i.e. transposed
    w.r.t. PyTorch, so the kernel computes y = x @ W + b.  W_pred and the x-half of fc
    are fused into one (H, 2K) block; b_lstm represents b_ih + b_hh.  All packing is
    done once here -> zero runtime cost, one input DMA at kernel launch.
    """
    H, K, T, G = HIDDEN_DIM, NUM_STATES, TRA_DIM, _G
    ks = jax.random.split(key, 8)
    s = 0.1
    W_pred = s * jax.random.normal(ks[0], (H, K), jnp.float32)      # predictors.weight.T
    b_pred = s * jax.random.normal(ks[1], (K,), jnp.float32)        # predictors.bias
    W_ih = s * jax.random.normal(ks[2], (K, G), jnp.float32)        # router.weight_ih_l0.T
    W_hh = s * jax.random.normal(ks[3], (T, G), jnp.float32)        # router.weight_hh_l0.T
    b_lstm = s * jax.random.normal(ks[4], (G,), jnp.float32)        # b_ih + b_hh
    W_fc_x = s * jax.random.normal(ks[5], (H, K), jnp.float32)      # fc.weight.T[:H]
    W_fc_h = s * jax.random.normal(ks[6], (T, K), jnp.float32)      # fc.weight.T[H:]
    b_fc = s * jax.random.normal(ks[7], (K,), jnp.float32)          # fc.bias

    slab = jnp.zeros((SLAB_ROWS, G), jnp.float32)
    slab = slab.at[ROW_WHH:ROW_WHH + T, :].set(W_hh)
    slab = slab.at[ROW_WIH:ROW_WIH + K, :].set(W_ih)
    slab = slab.at[ROW_BLSTM, :].set(b_lstm)
    slab = slab.at[ROW_BXCAT, :2 * K].set(jnp.concatenate([b_pred, b_fc]))
    slab = slab.at[ROW_WXCAT:ROW_WXCAT + H, :2 * K].set(
        jnp.concatenate([W_pred, W_fc_x], axis=1))
    slab = slab.at[ROW_WFCH:ROW_WFCH + T, :K].set(W_fc_h)
    return slab


if __name__ == "__main__":
    key = jax.random.PRNGKey(0)
    kx, kh, ky, kg, kp = jax.random.split(key, 5)
    B = 8
    x = jax.random.normal(kx, (B, HIDDEN_DIM), jnp.float32)
    hist_loss = jax.random.normal(kh, (B, HIST_LOSS_SEQ_LEN, NUM_STATES), jnp.float32)
    y = jax.random.normal(ky, (B, 1), jnp.float32)
    # gumbel noise for gumbel_softmax, sampled deterministically outside the kernel
    gumbel = jax.random.gumbel(kg, (B, NUM_STATES), dtype=jnp.float32)
    slab = init_params(kp)

    final_pred, aux = tra_forward(x, hist_loss, y, gumbel, slab)
    jax.block_until_ready((final_pred, aux))
    print("KERNEL_OK")
</pallas_src>

<mosaic_0001>
module attributes {stable_mosaic.version = 11 : i64} {
  func.func @_tra_kernel(%arg0: memref<8x32xf32, #tpu.memory_space<vmem>>, %arg1: memref<8x64xf32, #tpu.memory_space<vmem>>, %arg2: memref<8x1xf32, #tpu.memory_space<vmem>>, %arg3: memref<8x4xf32, #tpu.memory_space<vmem>>, %arg4: memref<56x32xf32, #tpu.memory_space<vmem>>, %arg5: memref<8x16xf32, #tpu.memory_space<vmem>>) attributes {dimension_semantics = [], scalar_prefetch = 0 : i64, scratch_operands = 0 : i64, tpu.core_type = #tpu.core_type<tc>} {
    %c0 = arith.constant 0 : index
    %c0_0 = arith.constant 0 : index
    %0 = vector.load %arg4[%c0, %c0_0] : memref<56x32xf32, #tpu.memory_space<vmem>>, vector<8x32xf32>
    %1 = arith.truncf %0 : vector<8x32xf32> to vector<8x32xbf16>
    %c8 = arith.constant 8 : index
    %c0_1 = arith.constant 0 : index
    %2 = vector.load %arg4[%c8, %c0_1] : memref<56x32xf32, #tpu.memory_space<vmem>>, vector<4x32xf32>
    %3 = arith.truncf %2 : vector<4x32xf32> to vector<4x32xbf16>
    %c12 = arith.constant 12 : index
    %c0_2 = arith.constant 0 : index
    %4 = vector.load %arg4[%c12, %c0_2] : memref<56x32xf32, #tpu.memory_space<vmem>>, vector<1x32xf32>
    %c13 = arith.constant 13 : index
    %c0_3 = arith.constant 0 : index
    %5 = vector.load %arg4[%c13, %c0_3] : memref<56x32xf32, #tpu.memory_space<vmem>>, vector<1x32xf32>
    %c16 = arith.constant 16 : index
    %c0_4 = arith.constant 0 : index
    %6 = vector.load %arg4[%c16, %c0_4] : memref<56x32xf32, #tpu.memory_space<vmem>>, vector<32x32xf32>
    %7 = arith.truncf %6 : vector<32x32xf32> to vector<32x32xbf16>
    %c48 = arith.constant 48 : index
    %c0_5 = arith.constant 0 : index
    %8 = vector.load %arg4[%c48, %c0_5] : memref<56x32xf32, #tpu.memory_space<vmem>>, vector<8x32xf32>
    %9 = arith.truncf %8 : vector<8x32xf32> to vector<8x32xbf16>
    %c0_6 = arith.constant 0 : index
    %c0_7 = arith.constant 0 : index
    %10 = vector.load %arg0[%c0_6, %c0_7] : memref<8x32xf32, #tpu.memory_space<vmem>>, vector<8x32xf32>
    %11 = arith.truncf %10 : vector<8x32xf32> to vector<8x32xbf16>
    %cst = arith.constant dense<0.000000e+00> : vector<8x32xf32>
    %12 = tpu.matmul %11, %7, %cst {dimension_numbers = #tpu.dot_dimension_numbers<[1], [0], [0], [1], [0, 0, 1, 1], [], []>} : vector<8x32xbf16>, vector<32x32xbf16>, vector<8x32xf32> -> vector<8x32xf32>
    %13 = vector.broadcast %5 : vector<1x32xf32> to vector<8x32xf32>
    %14 = arith.addf %12, %13 : vector<8x32xf32>
    %15 = vector.extract_strided_slice %14 {offsets = [0, 0], sizes = [8, 4], strides = [1, 1]} : vector<8x32xf32> to vector<8x4xf32>
    %16 = vector.extract_strided_slice %14 {offsets = [0, 4], sizes = [8, 4], strides = [1, 1]} : vector<8x32xf32> to vector<8x4xf32>
    %c0_8 = arith.constant 0 : index
    %c0_9 = arith.constant 0 : index
    %17 = vector.load %arg1[%c0_8, %c0_9] : memref<8x64xf32, #tpu.memory_space<vmem>>, vector<8x64xf32>
    %18 = vector.extract_strided_slice %17 {offsets = [0, 0], sizes = [8, 4], strides = [1, 1]} : vector<8x64xf32> to vector<8x4xf32>
    %19 = arith.truncf %18 : vector<8x4xf32> to vector<8x4xbf16>
    %cst_10 = arith.constant dense<0.000000e+00> : vector<8x32xf32>
    %20 = tpu.matmul %19, %3, %cst_10 {dimension_numbers = #tpu.dot_dimension_numbers<[1], [0], [0], [1], [0, 0, 1, 1], [], []>} : vector<8x4xbf16>, vector<4x32xbf16>, vector<8x32xf32> -> vector<8x32xf32>
    %21 = vector.broadcast %4 : vector<1x32xf32> to vector<8x32xf32>
    %22 = arith.addf %20, %21 : vector<8x32xf32>
    %23 = vector.extract_strided_slice %17 {offsets = [0, 4], sizes = [8, 4], strides = [1, 1]} : vector<8x64xf32> to vector<8x4xf32>
    %24 = arith.truncf %23 : vector<8x4xf32> to vector<8x4xbf16>
    %cst_11 = arith.constant dense<0.000000e+00> : vector<8x32xf32>
    %25 = tpu.matmul %24, %3, %cst_11 {dimension_numbers = #tpu.dot_dimension_numbers<[1], [0], [0], [1], [0, 0, 1, 1], [], []>} : vector<8x4xbf16>, vector<4x32xbf16>, vector<8x32xf32> -> vector<8x32xf32>
    %26 = vector.broadcast %4 : vector<1x32xf32> to vector<8x32xf32>
    %27 = arith.addf %25, %26 : vector<8x32xf32>
    %28 = vector.extract_strided_slice %17 {offsets = [0, 8], sizes = [8, 4], strides = [1, 1]} : vector<8x64xf32> to vector<8x4xf32>
    %29 = arith.truncf %28 : vector<8x4xf32> to vector<8x4xbf16>
    %cst_12 = arith.constant dense<0.000000e+00> : vector<8x32xf32>
    %30 = tpu.matmul %29, %3, %cst_12 {dimension_numbers = #tpu.dot_dimension_numbers<[1], [0], [0], [1], [0, 0, 1, 1], [], []>} : vector<8x4xbf16>, vector<4x32xbf16>, vector<8x32xf32> -> vector<8x32xf32>
    %31 = vector.broadcast %4 : vector<1x32xf32> to vector<8x32xf32>
    %32 = arith.addf %30, %31 : vector<8x32xf32>
    %33 = vector.extract_strided_slice %17 {offsets = [0, 12], sizes = [8, 4], strides = [1, 1]} : vector<8x64xf32> to vector<8x4xf32>
    %34 = arith.truncf %33 : vector<8x4xf32> to vector<8x4xbf16>
    %cst_13 = arith.constant dense<0.000000e+00> : vector<8x32xf32>
    %35 = tpu.matmul %34, %3, %cst_13 {dimension_numbers = #tpu.dot_dimension_numbers<[1], [0], [0], [1], [0, 0, 1, 1], [], []>} : vector<8x4xbf16>, vector<4x32xbf16>, vector<8x32xf32> -> vector<8x32xf32>
    %36 = vector.broadcast %4 : vector<1x32xf32> to vector<8x32xf32>
    %37 = arith.addf %35, %36 : vector<8x32xf32>
    %38 = vector.extract_strided_slice %17 {offsets = [0, 16], sizes = [8, 4], strides = [1, 1]} : vector<8x64xf32> to vector<8x4xf32>
    %39 = arith.truncf %38 : vector<8x4xf32> to vector<8x4xbf16>
    %cst_14 = arith.constant dense<0.000000e+00> : vector<8x32xf32>
    %40 = tpu.matmul %39, %3, %cst_14 {dimension_numbers = #tpu.dot_dimension_numbers<[1], [0], [0], [1], [0, 0, 1, 1], [], []>} : vector<8x4xbf16>, vector<4x32xbf16>, vector<8x32xf32> -> vector<8x32xf32>
    %41 = vector.broadcast %4 : vector<1x32xf32> to vector<8x32xf32>
    %42 = arith.addf %40, %41 : vector<8x32xf32>
    %43 = vector.extract_strided_slice %17 {offsets = [0, 20], sizes = [8, 4], strides = [1, 1]} : vector<8x64xf32> to vector<8x4xf32>
    %44 = arith.truncf %43 : vector<8x4xf32> to vector<8x4xbf16>
    %cst_15 = arith.constant dense<0.000000e+00> : vector<8x32xf32>
    %45 = tpu.matmul %44, %3, %cst_15 {dimension_numbers = #tpu.dot_dimension_numbers<[1], [0], [0], [1], [0, 0, 1, 1], [], []>} : vector<8x4xbf16>, vector<4x32xbf16>, vector<8x32xf32> -> vector<8x32xf32>
    %46 = vector.broadcast %4 : vector<1x32xf32> to vector<8x32xf32>
    %47 = arith.addf %45, %46 : vector<8x32xf32>
    %48 = vector.extract_strided_slice %17 {offsets = [0, 24], sizes = [8, 4], strides = [1, 1]} : vector<8x64xf32> to vector<8x4xf32>
    %49 = arith.truncf %48 : vector<8x4xf32> to vector<8x4xbf16>
    %cst_16 = arith.constant dense<0.000000e+00> : vector<8x32xf32>
    %50 = tpu.matmul %49, %3, %cst_16 {dimension_numbers = #tpu.dot_dimension_numbers<[1], [0], [0], [1], [0, 0, 1, 1], [], []>} : vector<8x4xbf16>, vector<4x32xbf16>, vector<8x32xf32> -> vector<8x32xf32>
    %51 = vector.broadcast %4 : vector<1x32xf32> to vector<8x32xf32>
    %52 = arith.addf %50, %51 : vector<8x32xf32>
    %53 = vector.extract_strided_slice %17 {offsets = [0, 28], sizes = [8, 4], strides = [1, 1]} : vector<8x64xf32> to vector<8x4xf32>
    %54 = arith.truncf %53 : vector<8x4xf32> to vector<8x4xbf16>
    %cst_17 = arith.constant dense<0.000000e+00> : vector<8x32xf32>
    %55 = tpu.matmul %54, %3, %cst_17 {dimension_numbers = #tpu.dot_dimension_numbers<[1], [0], [0], [1], [0, 0, 1, 1], [], []>} : vector<8x4xbf16>, vector<4x32xbf16>, vector<8x32xf32> -> vector<8x32xf32>
    %56 = vector.broadcast %4 : vector<1x32xf32> to vector<8x32xf32>
    %57 = arith.addf %55, %56 : vector<8x32xf32>
    %58 = vector.extract_strided_slice %17 {offsets = [0, 32], sizes = [8, 4], strides = [1, 1]} : vector<8x64xf32> to vector<8x4xf32>
    %59 = arith.truncf %58 : vector<8x4xf32> to vector<8x4xbf16>
    %cst_18 = arith.constant dense<0.000000e+00> : vector<8x32xf32>
    %60 = tpu.matmul %59, %3, %cst_18 {dimension_numbers = #tpu.dot_dimension_numbers<[1], [0], [0], [1], [0, 0, 1, 1], [], []>} : vector<8x4xbf16>, vector<4x32xbf16>, vector<8x32xf32> -> vector<8x32xf32>
    %61 = vector.broadcast %4 : vector<1x32xf32> to vector<8x32xf32>
    %62 = arith.addf %60, %61 : vector<8x32xf32>
    %63 = vector.extract_strided_slice %17 {offsets = [0, 36], sizes = [8, 4], strides = [1, 1]} : vector<8x64xf32> to vector<8x4xf32>
    %64 = arith.truncf %63 : vector<8x4xf32> to vector<8x4xbf16>
    %cst_19 = arith.constant dense<0.000000e+00> : vector<8x32xf32>
    %65 = tpu.matmul %64, %3, %cst_19 {dimension_numbers = #tpu.dot_dimension_numbers<[1], [0], [0], [1], [0, 0, 1, 1], [], []>} : vector<8x4xbf16>, vector<4x32xbf16>, vector<8x32xf32> -> vector<8x32xf32>
    %66 = vector.broadcast %4 : vector<1x32xf32> to vector<8x32xf32>
    %67 = arith.addf %65, %66 : vector<8x32xf32>
    %68 = vector.extract_strided_slice %17 {offsets = [0, 40], sizes = [8, 4], strides = [1, 1]} : vector<8x64xf32> to vector<8x4xf32>
    %69 = arith.truncf %68 : vector<8x4xf32> to vector<8x4xbf16>
    %cst_20 = arith.constant dense<0.000000e+00> : vector<8x32xf32>
    %70 = tpu.matmul %69, %3, %cst_20 {dimension_numbers = #tpu.dot_dimension_numbers<[1], [0], [0], [1], [0, 0, 1, 1], [], []>} : vector<8x4xbf16>, vector<4x32xbf16>, vector<8x32xf32> -> vector<8x32xf32>
    %71 = vector.broadcast %4 : vector<1x32xf32> to vector<8x32xf32>
    %72 = arith.addf %70, %71 : vector<8x32xf32>
    %73 = vector.extract_strided_slice %17 {offsets = [0, 44], sizes = [8, 4], strides = [1, 1]} : vector<8x64xf32> to vector<8x4xf32>
    %74 = arith.truncf %73 : vector<8x4xf32> to vector<8x4xbf16>
    %cst_21 = arith.constant dense<0.000000e+00> : vector<8x32xf32>
    %75 = tpu.matmul %74, %3, %cst_21 {dimension_numbers = #tpu.dot_dimension_numbers<[1], [0], [0], [1], [0, 0, 1, 1], [], []>} : vector<8x4xbf16>, vector<4x32xbf16>, vector<8x32xf32> -> vector<8x32xf32>
    %76 = vector.broadcast %4 : vector<1x32xf32> to vector<8x32xf32>
    %77 = arith.addf %75, %76 : vector<8x32xf32>
    %cst_22 = arith.constant 0.000000e+00 : f32
    %78 = vector.broadcast %cst_22 : f32 to vector<8x8xf32>
    %cst_23 = arith.constant 0.000000e+00 : f32
    %79 = vector.broadcast %cst_23 : f32 to vector<8x8xf32>
    %80 = arith.truncf %78 : vector<8x8xf32> to vector<8x8xbf16>
    %cst_24 = arith.constant dense<0.000000e+00> : vector<8x32xf32>
    %81 = tpu.matmul %80, %1, %cst_24 {dimension_numbers = #tpu.dot_dimension_numbers<[1], [0], [0], [1], [0, 0, 1, 1], [], []>} : vector<8x8xbf16>, vector<8x32xbf16>, vector<8x32xf32> -> vector<8x32xf32>
    %82 = arith.addf %22, %81 : vector<8x32xf32>
    %83 = arith.negf %82 : vector<8x32xf32>
    %84 = math.exp %83 : vector<8x32xf32>
    %cst_25 = arith.constant 1.000000e+00 : f32
    %85 = vector.broadcast %cst_25 : f32 to vector<8x32xf32>
    %86 = arith.addf %85, %84 : vector<8x32xf32>
    %87 = arith.divf %85, %86 : vector<8x32xf32>
    %88 = math.tanh %82 : vector<8x32xf32>
    %89 = vector.extract_strided_slice %87 {offsets = [0, 0], sizes = [8, 8], strides = [1, 1]} : vector<8x32xf32> to vector<8x8xf32>
    %90 = vector.extract_strided_slice %87 {offsets = [0, 8], sizes = [8, 8], strides = [1, 1]} : vector<8x32xf32> to vector<8x8xf32>
    %91 = vector.extract_strided_slice %88 {offsets = [0, 16], sizes = [8, 8], strides = [1, 1]} : vector<8x32xf32> to vector<8x8xf32>
    %92 = vector.extract_strided_slice %87 {offsets = [0, 24], sizes = [8, 8], strides = [1, 1]} : vector<8x32xf32> to vector<8x8xf32>
    %93 = arith.mulf %90, %79 : vector<8x8xf32>
    %94 = arith.mulf %89, %91 : vector<8x8xf32>
    %95 = arith.addf %93, %94 : vector<8x8xf32>
    %96 = math.tanh %95 : vector<8x8xf32>
    %97 = arith.mulf %92, %96 : vector<8x8xf32>
    %98 = arith.truncf %97 : vector<8x8xf32> to vector<8x8xbf16>
    %cst_26 = arith.constant dense<0.000000e+00> : vector<8x32xf32>
    %99 = tpu.matmul %98, %1, %cst_26 {dimension_numbers = #tpu.dot_dimension_numbers<[1], [0], [0], [1], [0, 0, 1, 1], [], []>} : vector<8x8xbf16>, vector<8x32xbf16>, vector<8x32xf32> -> vector<8x32xf32>
    %100 = arith.addf %27, %99 : vector<8x32xf32>
    %101 = arith.negf %100 : vector<8x32xf32>
    %102 = math.exp %101 : vector<8x32xf32>
    %cst_27 = arith.constant 1.000000e+00 : f32
    %103 = vector.broadcast %cst_27 : f32 to vector<8x32xf32>
    %104 = arith.addf %103, %102 : vector<8x32xf32>
    %105 = arith.divf %103, %104 : vector<8x32xf32>
    %106 = math.tanh %100 : vector<8x32xf32>
    %107 = vector.extract_strided_slice %105 {offsets = [0, 0], sizes = [8, 8], strides = [1, 1]} : vector<8x32xf32> to vector<8x8xf32>
    %108 = vector.extract_strided_slice %105 {offsets = [0, 8], sizes = [8, 8], strides = [1, 1]} : vector<8x32xf32> to vector<8x8xf32>
    %109 = vector.extract_strided_slice %106 {offsets = [0, 16], sizes = [8, 8], strides = [1, 1]} : vector<8x32xf32> to vector<8x8xf32>
    %110 = vector.extract_strided_slice %105 {offsets = [0, 24], sizes = [8, 8], strides = [1, 1]} : vector<8x32xf32> to vector<8x8xf32>
    %111 = arith.mulf %108, %95 : vector<8x8xf32>
    %112 = arith.mulf %107, %109 : vector<8x8xf32>
    %113 = arith.addf %111, %112 : vector<8x8xf32>
    %114 = math.tanh %113 : vector<8x8xf32>
    %115 = arith.mulf %110, %114 : vector<8x8xf32>
    %116 = arith.truncf %115 : vector<8x8xf32> to vector<8x8xbf16>
    %cst_28 = arith.constant dense<0.000000e+00> : vector<8x32xf32>
    %117 = tpu.matmul %116, %1, %cst_28 {dimension_numbers = #tpu.dot_dimension_numbers<[1], [0], [0], [1], [0, 0, 1, 1], [], []>} : vector<8x8xbf16>, vector<8x32xbf16>, vector<8x32xf32> -> vector<8x32xf32>
    %118 = arith.addf %32, %117 : vector<8x32xf32>
    %119 = arith.negf %118 : vector<8x32xf32>
    %120 = math.exp %119 : vector<8x32xf32>
    %cst_29 = arith.constant 1.000000e+00 : f32
    %121 = vector.broadcast %cst_29 : f32 to vector<8x32xf32>
    %122 = arith.addf %121, %120 : vector<8x32xf32>
    %123 = arith.divf %121, %122 : vector<8x32xf32>
    %124 = math.tanh %118 : vector<8x32xf32>
    %125 = vector.extract_strided_slice %123 {offsets = [0, 0], sizes = [8, 8], strides = [1, 1]} : vector<8x32xf32> to vector<8x8xf32>
    %126 = vector.extract_strided_slice %123 {offsets = [0, 8], sizes = [8, 8], strides = [1, 1]} : vector<8x32xf32> to vector<8x8xf32>
    %127 = vector.extract_strided_slice %124 {offsets = [0, 16], sizes = [8, 8], strides = [1, 1]} : vector<8x32xf32> to vector<8x8xf32>
    %128 = vector.extract_strided_slice %123 {offsets = [0, 24], sizes = [8, 8], strides = [1, 1]} : vector<8x32xf32> to vector<8x8xf32>
    %129 = arith.mulf %126, %113 : vector<8x8xf32>
    %130 = arith.mulf %125, %127 : vector<8x8xf32>
    %131 = arith.addf %129, %130 : vector<8x8xf32>
    %132 = math.tanh %131 : vector<8x8xf32>
    %133 = arith.mulf %128, %132 : vector<8x8xf32>
    %134 = arith.truncf %133 : vector<8x8xf32> to vector<8x8xbf16>
    %cst_30 = arith.constant dense<0.000000e+00> : vector<8x32xf32>
    %135 = tpu.matmul %134, %1, %cst_30 {dimension_numbers = #tpu.dot_dimension_numbers<[1], [0], [0], [1], [0, 0, 1, 1], [], []>} : vector<8x8xbf16>, vector<8x32xbf16>, vector<8x32xf32> -> vector<8x32xf32>
    %136 = arith.addf %37, %135 : vector<8x32xf32>
    %137 = arith.negf %136 : vector<8x32xf32>
    %138 = math.exp %137 : vector<8x32xf32>
    %cst_31 = arith.constant 1.000000e+00 : f32
    %139 = vector.broadcast %cst_31 : f32 to vector<8x32xf32>
    %140 = arith.addf %139, %138 : vector<8x32xf32>
    %141 = arith.divf %139, %140 : vector<8x32xf32>
    %142 = math.tanh %136 : vector<8x32xf32>
    %143 = vector.extract_strided_slice %141 {offsets = [0, 0], sizes = [8, 8], strides = [1, 1]} : vector<8x32xf32> to vector<8x8xf32>
    %144 = vector.extract_strided_slice %141 {offsets = [0, 8], sizes = [8, 8], strides = [1, 1]} : vector<8x32xf32> to vector<8x8xf32>
    %145 = vector.extract_strided_slice %142 {offsets = [0, 16], sizes = [8, 8], strides = [1, 1]} : vector<8x32xf32> to vector<8x8xf32>
    %146 = vector.extract_strided_slice %141 {offsets = [0, 24], sizes = [8, 8], strides = [1, 1]} : vector<8x32xf32> to vector<8x8xf32>
    %147 = arith.mulf %144, %131 : vector<8x8xf32>
    %148 = arith.mulf %143, %145 : vector<8x8xf32>
    %149 = arith.addf %147, %148 : vector<8x8xf32>
    %150 = math.tanh %149 : vector<8x8xf32>
    %151 = arith.mulf %146, %150 : vector<8x8xf32>
    %152 = arith.truncf %151 : vector<8x8xf32> to vector<8x8xbf16>
    %cst_32 = arith.constant dense<0.000000e+00> : vector<8x32xf32>
    %153 = tpu.matmul %152, %1, %cst_32 {dimension_numbers = #tpu.dot_dimension_numbers<[1], [0], [0], [1], [0, 0, 1, 1], [], []>} : vector<8x8xbf16>, vector<8x32xbf16>, vector<8x32xf32> -> vector<8x32xf32>
    %154 = arith.addf %42, %153 : vector<8x32xf32>
    %155 = arith.negf %154 : vector<8x32xf32>
    %156 = math.exp %155 : vector<8x32xf32>
    %cst_33 = arith.constant 1.000000e+00 : f32
    %157 = vector.broadcast %cst_33 : f32 to vector<8x32xf32>
    %158 = arith.addf %157, %156 : vector<8x32xf32>
    %159 = arith.divf %157, %158 : vector<8x32xf32>
    %160 = math.tanh %154 : vector<8x32xf32>
    %161 = vector.extract_strided_slice %159 {offsets = [0, 0], sizes = [8, 8], strides = [1, 1]} : vector<8x32xf32> to vector<8x8xf32>
    %162 = vector.extract_strided_slice %159 {offsets = [0, 8], sizes = [8, 8], strides = [1, 1]} : vector<8x32xf32> to vector<8x8xf32>
    %163 = vector.extract_strided_slice %160 {offsets = [0, 16], sizes = [8, 8], strides = [1, 1]} : vector<8x32xf32> to vector<8x8xf32>
    %164 = vector.extract_strided_slice %159 {offsets = [0, 24], sizes = [8, 8], strides = [1, 1]} : vector<8x32xf32> to vector<8x8xf32>
    %165 = arith.mulf %162, %149 : vector<8x8xf32>
    %166 = arith.mulf %161, %163 : vector<8x8xf32>
    %167 = arith.addf %165, %166 : vector<8x8xf32>
    %168 = math.tanh %167 : vector<8x8xf32>
    %169 = arith.mulf %164, %168 : vector<8x8xf32>
    %170 = arith.truncf %169 : vector<8x8xf32> to vector<8x8xbf16>
    %cst_34 = arith.constant dense<0.000000e+00> : vector<8x32xf32>
    %171 = tpu.matmul %170, %1, %cst_34 {dimension_numbers = #tpu.dot_dimension_numbers<[1], [0], [0], [1], [0, 0, 1, 1], [], []>} : vector<8x8xbf16>, vector<8x32xbf16>, vector<8x32xf32> -> vector<8x32xf32>
    %172 = arith.addf %47, %171 : vector<8x32xf32>
    %173 = arith.negf %172 : vector<8x32xf32>
    %174 = math.exp %173 : vector<8x32xf32>
    %cst_35 = arith.constant 1.000000e+00 : f32
    %175 = vector.broadcast %cst_35 : f32 to vector<8x32xf32>
    %176 = arith.addf %175, %174 : vector<8x32xf32>
    %177 = arith.divf %175, %176 : vector<8x32xf32>
    %178 = math.tanh %172 : vector<8x32xf32>
    %179 = vector.extract_strided_slice %177 {offsets = [0, 0], sizes = [8, 8], strides = [1, 1]} : vector<8x32xf32> to vector<8x8xf32>
    %180 = vector.extract_strided_slice %177 {offsets = [0, 8], sizes = [8, 8], strides = [1, 1]} : vector<8x32xf32> to vector<8x8xf32>
    %181 = vector.extract_strided_slice %178 {offsets = [0, 16], sizes = [8, 8], strides = [1, 1]} : vector<8x32xf32> to vector<8x8xf32>
    %182 = vector.extract_strided_slice %177 {offsets = [0, 24], sizes = [8, 8], strides = [1, 1]} : vector<8x32xf32> to vector<8x8xf32>
    %183 = arith.mulf %180, %167 : vector<8x8xf32>
    %184 = arith.mulf %179, %181 : vector<8x8xf32>
    %185 = arith.addf %183, %184 : vector<8x8xf32>
    %186 = math.tanh %185 : vector<8x8xf32>
    %187 = arith.mulf %182, %186 : vector<8x8xf32>
    %188 = arith.truncf %187 : vector<8x8xf32> to vector<8x8xbf16>
    %cst_36 = arith.constant dense<0.000000e+00> : vector<8x32xf32>
    %189 = tpu.matmul %188, %1, %cst_36 {dimension_numbers = #tpu.dot_dimension_numbers<[1], [0], [0], [1], [0, 0, 1, 1], [], []>} : vector<8x8xbf16>, vector<8x32xbf16>, vector<8x32xf32> -> vector<8x32xf32>
    %190 = arith.addf %52, %189 : vector<8x32xf32>
    %191 = arith.negf %190 : vector<8x32xf32>
    %192 = math.exp %191 : vector<8x32xf32>
    %cst_37 = arith.constant 1.000000e+00 : f32
    %193 = vector.broadcast %cst_37 : f32 to vector<8x32xf32>
    %194 = arith.addf %193, %192 : vector<8x32xf32>
    %195 = arith.divf %193, %194 : vector<8x32xf32>
    %196 = math.tanh %190 : vector<8x32xf32>
    %197 = vector.extract_strided_slice %195 {offsets = [0, 0], sizes = [8, 8], strides = [1, 1]} : vector<8x32xf32> to vector<8x8xf32>
    %198 = vector.extract_strided_slice %195 {offsets = [0, 8], sizes = [8, 8], strides = [1, 1]} : vector<8x32xf32> to vector<8x8xf32>
    %199 = vector.extract_strided_slice %196 {offsets = [0, 16], sizes = [8, 8], strides = [1, 1]} : vector<8x32xf32> to vector<8x8xf32>
    %200 = vector.extract_strided_slice %195 {offsets = [0, 24], sizes = [8, 8], strides = [1, 1]} : vector<8x32xf32> to vector<8x8xf32>
    %201 = arith.mulf %198, %185 : vector<8x8xf32>
    %202 = arith.mulf %197, %199 : vector<8x8xf32>
    %203 = arith.addf %201, %202 : vector<8x8xf32>
    %204 = math.tanh %203 : vector<8x8xf32>
    %205 = arith.mulf %200, %204 : vector<8x8xf32>
    %206 = arith.truncf %205 : vector<8x8xf32> to vector<8x8xbf16>
    %cst_38 = arith.constant dense<0.000000e+00> : vector<8x32xf32>
    %207 = tpu.matmul %206, %1, %cst_38 {dimension_numbers = #tpu.dot_dimension_numbers<[1], [0], [0], [1], [0, 0, 1, 1], [], []>} : vector<8x8xbf16>, vector<8x32xbf16>, vector<8x32xf32> -> vector<8x32xf32>
    %208 = arith.addf %57, %207 : vector<8x32xf32>
    %209 = arith.negf %208 : vector<8x32xf32>
    %210 = math.exp %209 : vector<8x32xf32>
    %cst_39 = arith.constant 1.000000e+00 : f32
    %211 = vector.broadcast %cst_39 : f32 to vector<8x32xf32>
    %212 = arith.addf %211, %210 : vector<8x32xf32>
    %213 = arith.divf %211, %212 : vector<8x32xf32>
    %214 = math.tanh %208 : vector<8x32xf32>
    %215 = vector.extract_strided_slice %213 {offsets = [0, 0], sizes = [8, 8], strides = [1, 1]} : vector<8x32xf32> to vector<8x8xf32>
    %216 = vector.extract_strided_slice %213 {offsets = [0, 8], sizes = [8, 8], strides = [1, 1]} : vector<8x32xf32> to vector<8x8xf32>
    %217 = vector.extract_strided_slice %214 {offsets = [0, 16], sizes = [8, 8], strides = [1, 1]} : vector<8x32xf32> to vector<8x8xf32>
    %218 = vector.extract_strided_slice %213 {offsets = [0, 24], sizes = [8, 8], strides = [1, 1]} : vector<8x32xf32> to vector<8x8xf32>
    %219 = arith.mulf %216, %203 : vector<8x8xf32>
    %220 = arith.mulf %215, %217 : vector<8x8xf32>
    %221 = arith.addf %219, %220 : vector<8x8xf32>
    %222 = math.tanh %221 : vector<8x8xf32>
    %223 = arith.mulf %218, %222 : vector<8x8xf32>
    %224 = arith.truncf %223 : vector<8x8xf32> to vector<8x8xbf16>
    %cst_40 = arith.constant dense<0.000000e+00> : vector<8x32xf32>
    %225 = tpu.matmul %224, %1, %cst_40 {dimension_numbers = #tpu.dot_dimension_numbers<[1], [0], [0], [1], [0, 0, 1, 1], [], []>} : vector<8x8xbf16>, vector<8x32xbf16>, vector<8x32xf32> -> vector<8x32xf32>
    %226 = arith.addf %62, %225 : vector<8x32xf32>
    %227 = arith.negf %226 : vector<8x32xf32>
    %228 = math.exp %227 : vector<8x32xf32>
    %cst_41 = arith.constant 1.000000e+00 : f32
    %229 = vector.broadcast %cst_41 : f32 to vector<8x32xf32>
    %230 = arith.addf %229, %228 : vector<8x32xf32>
    %231 = arith.divf %229, %230 : vector<8x32xf32>
    %232 = math.tanh %226 : vector<8x32xf32>
    %233 = vector.extract_strided_slice %231 {offsets = [0, 0], sizes = [8, 8], strides = [1, 1]} : vector<8x32xf32> to vector<8x8xf32>
    %234 = vector.extract_strided_slice %231 {offsets = [0, 8], sizes = [8, 8], strides = [1, 1]} : vector<8x32xf32> to vector<8x8xf32>
    %235 = vector.extract_strided_slice %232 {offsets = [0, 16], sizes = [8, 8], strides = [1, 1]} : vector<8x32xf32> to vector<8x8xf32>
    %236 = vector.extract_strided_slice %231 {offsets = [0, 24], sizes = [8, 8], strides = [1, 1]} : vector<8x32xf32> to vector<8x8xf32>
    %237 = arith.mulf %234, %221 : vector<8x8xf32>
    %238 = arith.mulf %233, %235 : vector<8x8xf32>
    %239 = arith.addf %237, %238 : vector<8x8xf32>
    %240 = math.tanh %239 : vector<8x8xf32>
    %241 = arith.mulf %236, %240 : vector<8x8xf32>
    %242 = arith.truncf %241 : vector<8x8xf32> to vector<8x8xbf16>
    %cst_42 = arith.constant dense<0.000000e+00> : vector<8x32xf32>
    %243 = tpu.matmul %242, %1, %cst_42 {dimension_numbers = #tpu.dot_dimension_numbers<[1], [0], [0], [1], [0, 0, 1, 1], [], []>} : vector<8x8xbf16>, vector<8x32xbf16>, vector<8x32xf32> -> vector<8x32xf32>
    %244 = arith.addf %67, %243 : vector<8x32xf32>
    %245 = arith.negf %244 : vector<8x32xf32>
    %246 = math.exp %245 : vector<8x32xf32>
    %cst_43 = arith.constant 1.000000e+00 : f32
    %247 = vector.broadcast %cst_43 : f32 to vector<8x32xf32>
    %248 = arith.addf %247, %246 : vector<8x32xf32>
    %249 = arith.divf %247, %248 : vector<8x32xf32>
    %250 = math.tanh %244 : vector<8x32xf32>
    %251 = vector.extract_strided_slice %249 {offsets = [0, 0], sizes = [8, 8], strides = [1, 1]} : vector<8x32xf32> to vector<8x8xf32>
    %252 = vector.extract_strided_slice %249 {offsets = [0, 8], sizes = [8, 8], strides = [1, 1]} : vector<8x32xf32> to vector<8x8xf32>
    %253 = vector.extract_strided_slice %250 {offsets = [0, 16], sizes = [8, 8], strides = [1, 1]} : vector<8x32xf32> to vector<8x8xf32>
    %254 = vector.extract_strided_slice %249 {offsets = [0, 24], sizes = [8, 8], strides = [1, 1]} : vector<8x32xf32> to vector<8x8xf32>
    %255 = arith.mulf %252, %239 : vector<8x8xf32>
    %256 = arith.mulf %251, %253 : vector<8x8xf32>
    %257 = arith.addf %255, %256 : vector<8x8xf32>
    %258 = math.tanh %257 : vector<8x8xf32>
    %259 = arith.mulf %254, %258 : vector<8x8xf32>
    %260 = arith.truncf %259 : vector<8x8xf32> to vector<8x8xbf16>
    %cst_44 = arith.constant dense<0.000000e+00> : vector<8x32xf32>
    %261 = tpu.matmul %260, %1, %cst_44 {dimension_numbers = #tpu.dot_dimension_numbers<[1], [0], [0], [1], [0, 0, 1, 1], [], []>} : vector<8x8xbf16>, vector<8x32xbf16>, vector<8x32xf32> -> vector<8x32xf32>
    %262 = arith.addf %72, %261 : vector<8x32xf32>
    %263 = arith.negf %262 : vector<8x32xf32>
    %264 = math.exp %263 : vector<8x32xf32>
    %cst_45 = arith.constant 1.000000e+00 : f32
    %265 = vector.broadcast %cst_45 : f32 to vector<8x32xf32>
    %266 = arith.addf %265, %264 : vector<8x32xf32>
    %267 = arith.divf %265, %266 : vector<8x32xf32>
    %268 = math.tanh %262 : vector<8x32xf32>
    %269 = vector.extract_strided_slice %267 {offsets = [0, 0], sizes = [8, 8], strides = [1, 1]} : vector<8x32xf32> to vector<8x8xf32>
    %270 = vector.extract_strided_slice %267 {offsets = [0, 8], sizes = [8, 8], strides = [1, 1]} : vector<8x32xf32> to vector<8x8xf32>
    %271 = vector.extract_strided_slice %268 {offsets = [0, 16], sizes = [8, 8], strides = [1, 1]} : vector<8x32xf32> to vector<8x8xf32>
    %272 = vector.extract_strided_slice %267 {offsets = [0, 24], sizes = [8, 8], strides = [1, 1]} : vector<8x32xf32> to vector<8x8xf32>
    %273 = arith.mulf %270, %257 : vector<8x8xf32>
    %274 = arith.mulf %269, %271 : vector<8x8xf32>
    %275 = arith.addf %273, %274 : vector<8x8xf32>
    %276 = math.tanh %275 : vector<8x8xf32>
    %277 = arith.mulf %272, %276 : vector<8x8xf32>
    %278 = arith.truncf %277 : vector<8x8xf32> to vector<8x8xbf16>
    %cst_46 = arith.constant dense<0.000000e+00> : vector<8x32xf32>
    %279 = tpu.matmul %278, %1, %cst_46 {dimension_numbers = #tpu.dot_dimension_numbers<[1], [0], [0], [1], [0, 0, 1, 1], [], []>} : vector<8x8xbf16>, vector<8x32xbf16>, vector<8x32xf32> -> vector<8x32xf32>
    %280 = arith.addf %77, %279 : vector<8x32xf32>
    %281 = arith.negf %280 : vector<8x32xf32>
    %282 = math.exp %281 : vector<8x32xf32>
    %cst_47 = arith.constant 1.000000e+00 : f32
    %283 = vector.broadcast %cst_47 : f32 to vector<8x32xf32>
    %284 = arith.addf %283, %282 : vector<8x32xf32>
    %285 = arith.divf %283, %284 : vector<8x32xf32>
    %286 = math.tanh %280 : vector<8x32xf32>
    %287 = vector.extract_strided_slice %285 {offsets = [0, 0], sizes = [8, 8], strides = [1, 1]} : vector<8x32xf32> to vector<8x8xf32>
    %288 = vector.extract_strided_slice %285 {offsets = [0, 8], sizes = [8, 8], strides = [1, 1]} : vector<8x32xf32> to vector<8x8xf32>
    %289 = vector.extract_strided_slice %286 {offsets = [0, 16], sizes = [8, 8], strides = [1, 1]} : vector<8x32xf32> to vector<8x8xf32>
    %290 = vector.extract_strided_slice %285 {offsets = [0, 24], sizes = [8, 8], strides = [1, 1]} : vector<8x32xf32> to vector<8x8xf32>
    %291 = arith.mulf %288, %275 : vector<8x8xf32>
    %292 = arith.mulf %287, %289 : vector<8x8xf32>
    %293 = arith.addf %291, %292 : vector<8x8xf32>
    %294 = math.tanh %293 : vector<8x8xf32>
    %295 = arith.mulf %290, %294 : vector<8x8xf32>
    %296 = arith.truncf %295 : vector<8x8xf32> to vector<8x8xbf16>
    %cst_48 = arith.constant dense<0.000000e+00> : vector<8x32xf32>
    %297 = tpu.matmul %296, %9, %cst_48 {dimension_numbers = #tpu.dot_dimension_numbers<[1], [0], [0], [1], [0, 0, 1, 1], [], []>} : vector<8x8xbf16>, vector<8x32xbf16>, vector<8x32xf32> -> vector<8x32xf32>
    %298 = vector.extract_strided_slice %297 {offsets = [0, 0], sizes = [8, 4], strides = [1, 1]} : vector<8x32xf32> to vector<8x4xf32>
    %299 = arith.addf %16, %298 : vector<8x4xf32>
    %c0_49 = arith.constant 0 : index
    %c0_50 = arith.constant 0 : index
    %300 = vector.load %arg3[%c0_49, %c0_50] : memref<8x4xf32, #tpu.memory_space<vmem>>, vector<8x4xf32>
    %301 = arith.addf %299, %300 : vector<8x4xf32>
    %cst_51 = arith.constant 1.000000e+00 : f32
    %302 = vector.broadcast %cst_51 : f32 to vector<8x4xf32>
    %303 = arith.mulf %301, %302 : vector<8x4xf32>
    %cst_52 = arith.constant dense<0xFF800000> : vector<8xf32>
    %304 = vector.multi_reduction <maximumf>, %303, %cst_52 [1] : vector<8x4xf32> to vector<8xf32>
    %305 = vector.shape_cast %304 : vector<8xf32> to vector<8x1xf32>
    %306 = vector.broadcast %305 : vector<8x1xf32> to vector<8x4xf32>
    %307 = arith.subf %303, %306 : vector<8x4xf32>
    %308 = math.exp %307 : vector<8x4xf32>
    %cst_53 = arith.constant dense<0.000000e+00> : vector<8xf32>
    %309 = vector.multi_reduction <add>, %308, %cst_53 [1] : vector<8x4xf32> to vector<8xf32>
    %310 = vector.shape_cast %309 : vector<8xf32> to vector<8x1xf32>
    %311 = tpu.reciprocal %310 {approx = true} : vector<8x1xf32> -> vector<8x1xf32>
    %312 = vector.broadcast %311 : vector<8x1xf32> to vector<8x4xf32>
    %313 = arith.mulf %308, %312 : vector<8x4xf32>
    %314 = arith.mulf %15, %313 : vector<8x4xf32>
    %cst_54 = arith.constant dense<0.000000e+00> : vector<8xf32>
    %315 = vector.multi_reduction <add>, %314, %cst_54 [1] : vector<8x4xf32> to vector<8xf32>
    %316 = vector.shape_cast %315 : vector<8xf32> to vector<8x1xf32>
    %c0_55 = arith.constant 0 : index
    %c0_56 = arith.constant 0 : index
    %317 = vector.load %arg2[%c0_55, %c0_56] : memref<8x1xf32, #tpu.memory_space<vmem>>, vector<8x1xf32>
    %318 = vector.broadcast %317 : vector<8x1xf32> to vector<8x4xf32>
    %319 = arith.subf %15, %318 : vector<8x4xf32>
    %320 = arith.mulf %319, %319 : vector<8x4xf32>
    %cst_57 = arith.constant dense<0x7F800000> : vector<8xf32>
    %321 = vector.multi_reduction <minimumf>, %320, %cst_57 [1] : vector<8x4xf32> to vector<8xf32>
    %322 = vector.shape_cast %321 : vector<8xf32> to vector<8x1xf32>
    %323 = vector.broadcast %322 : vector<8x1xf32> to vector<8x4xf32>
    %324 = arith.subf %320, %323 : vector<8x4xf32>
    %cst_58 = arith.constant 9.99999997E-7 : f32
    %325 = vector.broadcast %cst_58 : f32 to vector<8x4xf32>
    %326 = arith.addf %324, %325 : vector<8x4xf32>
    %cst_59 = arith.constant 0.000000e+00 : f32
    %327 = vector.broadcast %cst_59 : f32 to vector<8x4xf32>
    %328 = arith.subf %327, %326 : vector<8x4xf32>
    %329 = tpu.weird %328 : vector<8x4xf32> -> vector<8x4xi1>
    %cst_60 = arith.constant dense<true> : vector<8x4xi1>
    %330 = arith.xori %329, %cst_60 : vector<8x4xi1>
    %cst_61 = arith.constant 0xFF800000 : f32
    %331 = vector.broadcast %cst_61 : f32 to vector<8x4xf32>
    %332 = arith.select %330, %328, %331 : vector<8x4xi1>, vector<8x4xf32>
    %333 = vector.shape_cast %332 : vector<8x4xf32> to vector<1x8x4xf32>
    %cst_62 = arith.constant dense<0xFF800000> : vector<1xf32>
    %334 = vector.multi_reduction <maximumf>, %333, %cst_62 [1, 2] : vector<1x8x4xf32> to vector<1xf32>
    %335 = vector.shape_cast %334 : vector<1xf32> to vector<1x1x1xf32>
    %336 = vector.extract %335[0, 0, 0] : f32 from vector<1x1x1xf32>
    %337 = vector.broadcast %336 : f32 to vector<1x1xf32>
    %338 = vector.shape_cast %337 : vector<1x1xf32> to vector<1x1xf32>
    %339 = vector.broadcast %338 : vector<1x1xf32> to vector<8x4xf32>
    %340 = arith.select %330, %328, %339 : vector<8x4xi1>, vector<8x4xf32>
    %cst_63 = arith.constant 1.000000e+02 : f32
    %341 = vector.broadcast %cst_63 : f32 to vector<8x4xf32>
    %342 = arith.mulf %340, %341 : vector<8x4xf32>
    %343 = math.exp %342 : vector<8x4xf32>
    %cst_64 = arith.constant dense<0.000000e+00> : vector<4xf32>
    %344 = vector.multi_reduction <add>, %343, %cst_64 [0] : vector<8x4xf32> to vector<4xf32>
    %345 = vector.shape_cast %344 : vector<4xf32> to vector<1x4xf32>
    %cst_65 = arith.constant 1.000000e-30 : f32
    %346 = vector.broadcast %cst_65 : f32 to vector<1x4xf32>
    %347 = arith.maximumf %345, %346 : vector<1x4xf32>
    %348 = tpu.reciprocal %347 {approx = true} : vector<1x4xf32> -> vector<1x4xf32>
    %349 = vector.broadcast %348 : vector<1x4xf32> to vector<8x4xf32>
    %350 = arith.mulf %343, %349 : vector<8x4xf32>
    %cst_66 = arith.constant dense<0.000000e+00> : vector<8xf32>
    %351 = vector.multi_reduction <add>, %350, %cst_66 [1] : vector<8x4xf32> to vector<8xf32>
    %352 = vector.shape_cast %351 : vector<8xf32> to vector<8x1xf32>
    %cst_67 = arith.constant 1.000000e-30 : f32
    %353 = vector.broadcast %cst_67 : f32 to vector<8x1xf32>
    %354 = arith.maximumf %352, %353 : vector<8x1xf32>
    %355 = tpu.reciprocal %354 {approx = true} : vector<8x1xf32> -> vector<8x1xf32>
    %356 = vector.broadcast %355 : vector<8x1xf32> to vector<8x4xf32>
    %357 = arith.mulf %350, %356 : vector<8x4xf32>
    %cst_68 = arith.constant dense<0.000000e+00> : vector<4xf32>
    %358 = vector.multi_reduction <add>, %357, %cst_68 [0] : vector<8x4xf32> to vector<4xf32>
    %359 = vector.shape_cast %358 : vector<4xf32> to vector<1x4xf32>
    %cst_69 = arith.constant 1.000000e-30 : f32
    %360 = vector.broadcast %cst_69 : f32 to vector<1x4xf32>
    %361 = arith.maximumf %359, %360 : vector<1x4xf32>
    %362 = tpu.reciprocal %361 {approx = true} : vector<1x4xf32> -> vector<1x4xf32>
    %363 = vector.broadcast %362 : vector<1x4xf32> to vector<8x4xf32>
    %364 = arith.mulf %357, %363 : vector<8x4xf32>
    %cst_70 = arith.constant dense<0.000000e+00> : vector<8xf32>
    %365 = vector.multi_reduction <add>, %364, %cst_70 [1] : vector<8x4xf32> to vector<8xf32>
    %366 = vector.shape_cast %365 : vector<8xf32> to vector<8x1xf32>
    %cst_71 = arith.constant 1.000000e-30 : f32
    %367 = vector.broadcast %cst_71 : f32 to vector<8x1xf32>
    %368 = arith.maximumf %366, %367 : vector<8x1xf32>
    %369 = tpu.reciprocal %368 {approx = true} : vector<8x1xf32> -> vector<8x1xf32>
    %370 = vector.broadcast %369 : vector<8x1xf32> to vector<8x4xf32>
    %371 = arith.mulf %364, %370 : vector<8x4xf32>
    %cst_72 = arith.constant dense<0.000000e+00> : vector<4xf32>
    %372 = vector.multi_reduction <add>, %371, %cst_72 [0] : vector<8x4xf32> to vector<4xf32>
    %373 = vector.shape_cast %372 : vector<4xf32> to vector<1x4xf32>
    %cst_73 = arith.constant 1.000000e-30 : f32
    %374 = vector.broadcast %cst_73 : f32 to vector<1x4xf32>
    %375 = arith.maximumf %373, %374 : vector<1x4xf32>
    %376 = tpu.reciprocal %375 {approx = true} : vector<1x4xf32> -> vector<1x4xf32>
    %377 = vector.broadcast %376 : vector<1x4xf32> to vector<8x4xf32>
    %378 = arith.mulf %371, %377 : vector<8x4xf32>
    %cst_74 = arith.constant dense<0.000000e+00> : vector<8xf32>
    %379 = vector.multi_reduction <add>, %378, %cst_74 [1] : vector<8x4xf32> to vector<8xf32>
    %380 = vector.shape_cast %379 : vector<8xf32> to vector<8x1xf32>
    %cst_75 = arith.constant 1.000000e-30 : f32
    %381 = vector.broadcast %cst_75 : f32 to vector<8x1xf32>
    %382 = arith.maximumf %380, %381 : vector<8x1xf32>
    %383 = tpu.reciprocal %382 {approx = true} : vector<8x1xf32> -> vector<8x1xf32>
    %384 = vector.broadcast %383 : vector<8x1xf32> to vector<8x4xf32>
    %385 = arith.mulf %378, %384 : vector<8x4xf32>
    %cst_76 = arith.constant 9.99999974E-5 : f32
    %386 = vector.broadcast %cst_76 : f32 to vector<8x4xf32>
    %387 = arith.addf %313, %386 : vector<8x4xf32>
    %388 = math.log %387 : vector<8x4xf32>
    %389 = arith.mulf %388, %385 : vector<8x4xf32>
    %cst_77 = arith.constant dense<0.000000e+00> : vector<8xf32>
    %390 = vector.multi_reduction <add>, %389, %cst_77 [1] : vector<8x4xf32> to vector<8xf32>
    %391 = vector.shape_cast %390 : vector<8xf32> to vector<8x1xf32>
    %cst_78 = arith.constant dense<0.000000e+00> : vector<1xf32>
    %392 = vector.multi_reduction <add>, %391, %cst_78 [0] : vector<8x1xf32> to vector<1xf32>
    %393 = vector.shape_cast %392 : vector<1xf32> to vector<1x1xf32>
    %cst_79 = arith.constant 1.250000e-01 : f32
    %394 = vector.broadcast %cst_79 : f32 to vector<1x1xf32>
    %395 = arith.mulf %393, %394 : vector<1x1xf32>
    %cst_80 = arith.constant -0.00999999977 : f32
    %396 = vector.broadcast %cst_80 : f32 to vector<1x1xf32>
    %397 = arith.mulf %396, %395 : vector<1x1xf32>
    %cst_81 = arith.constant 0.000000e+00 : f32
    %398 = vector.broadcast %cst_81 : f32 to vector<8x16xf32>
    %c0_82 = arith.constant 0 : index
    %c0_83 = arith.constant 0 : index
    %399 = vector.load %arg5[%c0_82, %c0_83] : memref<8x16xf32, #tpu.memory_space<vmem>>, vector<8x16xf32>
    tpu.vector_store %arg5[%c0_82, %c0_83], %398 {strides = array<i32>} : memref<8x16xf32, #tpu.memory_space<vmem>>, vector<8x16xf32>,
    %c0_84 = arith.constant 0 : index
    %c0_85 = arith.constant 0 : index
    %400 = vector.load %arg5[%c0_84, %c0_85] : memref<8x16xf32, #tpu.memory_space<vmem>>, vector<8x1xf32>
    tpu.vector_store %arg5[%c0_84, %c0_85], %316 {strides = array<i32>} : memref<8x16xf32, #tpu.memory_space<vmem>>, vector<8x1xf32>,
    %c0_86 = arith.constant 0 : index
    %c1 = arith.constant 1 : index
    %401 = vector.load %arg5[%c0_86, %c1] : memref<8x16xf32, #tpu.memory_space<vmem>>, vector<8x4xf32>
    tpu.vector_store %arg5[%c0_86, %c1], %15 {strides = array<i32>} : memref<8x16xf32, #tpu.memory_space<vmem>>, vector<8x4xf32>,
    %c0_87 = arith.constant 0 : index
    %c5 = arith.constant 5 : index
    %402 = vector.load %arg5[%c0_87, %c5] : memref<8x16xf32, #tpu.memory_space<vmem>>, vector<8x4xf32>
    tpu.vector_store %arg5[%c0_87, %c5], %313 {strides = array<i32>} : memref<8x16xf32, #tpu.memory_space<vmem>>, vector<8x4xf32>,
    %403 = vector.shape_cast %397 : vector<1x1xf32> to vector<1x1xf32>
    %404 = vector.broadcast %403 : vector<1x1xf32> to vector<8x1xf32>
    %c0_88 = arith.constant 0 : index
    %c9 = arith.constant 9 : index
    %405 = vector.load %arg5[%c0_88, %c9] : memref<8x16xf32, #tpu.memory_space<vmem>>, vector<8x1xf32>
    tpu.vector_store %arg5[%c0_88, %c9], %404 {strides = array<i32>} : memref<8x16xf32, #tpu.memory_space<vmem>>, vector<8x1xf32>,
    return
  }
}

</mosaic_0001>

<bundles_post_ra>
// kernel: tra_forward.1
= control target key start
LH: loop header
LB: loop body
LE: loop exit
PB: predicated region body
PF: predicated region fallthrough
CT: control target
= control target key end

     0   :  { %v2155_v1 = vmov 0.0   ;;  %vm95_vm0 = vcmask 1041408   ;;  %vm2156_vm1 = vmmov 0   ;;  %s2158_s22 = smov 108   ;;  %s2159_s23 = smov 116   ;;  %vm41_vm2 = vcmask 261120   ;;  %s2505_s1 = inlined_call_operand.vmem [shape: f32[8,64], index: 1, kind: input, shape index: {}]   ;;  %s2506_s4 = inlined_call_operand.vmem [shape: f32[56,32], index: 4, kind: input, shape index: {}]   ;;  %s2507_s0 = inlined_call_operand.vmem [shape: f32[8,32], index: 0, kind: input, shape index: {}]   ;;  %s2508_s2 = inlined_call_operand.vmem [shape: f32[8,1], index: 2, kind: input, shape index: {}]   ;;  %s2509_s3 = inlined_call_operand.vmem [shape: f32[8,4], index: 3, kind: input, shape index: {}]   ;;  %s2510_s5 = inlined_call_operand.vmem [shape: f32[8,16], index: 5, kind: output, shape index: {}]  }
   0x1   :  { %v85_v0 = vld [vmem:[%s2505_s1] sm:$0xff]  ;;  %1815 = vmatprep.subr.bf16.mxu1 %v2155_v1  ;;  %v23_v2 = vld [vmem:[%s2506_s4 + $0x8] sm:$0xf]  ;;  %1817 = vmatprep.mubr.msk.bf16.mxu1 %vm2156_vm1, %v2155_v1  ;;  %s2157_s1 = smov 124   ;;  %s2160_s24 = smov 100   ;;  %v27_v6 = vld [vmem:[%s2506_s4 + $0x10] sm:$0xff] }
   0x2   :  { %v2213_v3 = vpack.c.bf16 %v85_v0, %v85_v0  ;;  %v24_v4 = vpack.c.bf16 %v23_v2, %v23_v2  ;;  %1801 = vmatprep.subr.bf16.mxu0 %v2155_v1  ;;  %1805 = vmatprep.mubr.msk.bf16.mxu0 %vm2156_vm1, %v2155_v1  ;;  %s2161_s25 = smov 92   ;;  %s2162_s26 = smov 84   ;;  %v28_v7 = vld [vmem:[%s2506_s4 + $0x18] sm:$0xff]  ;;  %v29_v9 = vld [vmem:[%s2506_s4 + $0x20] sm:$0xff]  ;;  %v30_v10 = vld [vmem:[%s2506_s4 + $0x28] sm:$0xff]  ;;  %vm91_vm3 = vcmask 31744  }
   0x3   :  { %v31_v8 = vpack.c.bf16 %v28_v7, %v27_v6  ;;  %v32_v11 = vpack.c.bf16 %v30_v10, %v29_v9  ;;  %v35_v12 = vld [vmem:[%s2507_s0] sm:$0xff]  ;;  %v2163_v14 = vmov 0   ;;  %vm639_vm4 = vcmask 1043456   ;;  %v2301_v32 = vld [vmem:[%s2506_s4 + $0xc] ss:$0 sm:$0xff]  ;;  %s2164_s15 = smov 112  }
   0x4   :  { %140 = vrot.lane.b32.xlu0 %v2213_v3, %s2157_s1  ;;  %320 = vrot.lane.b32.xlu1 %v2213_v3, %s2158_s22  ;;  %v2221_v5 = vsel %vm95_vm0, %v24_v4, 0  ;;  %v36_v13 = vpack.c.bf16 %v35_v12, %v35_v12  ;;  %v21_v20 = vld [vmem:[%s2506_s4] sm:$0xff]  ;;  %s2165_s16 = smov 8   ;;  %s2166_s17 = smov 16   ;;  %vm635_vm5 = vcmask 64512   ;;  %vm2171_vm7 = vmmov 1  }
   0x5   :  { %1816 = vmatpush3.bf16.msra.mxu1 %v2221_v5  ;;  %1802 = vmatpush3.bf16.msra.mxu0 %v31_v8  ;;  %v22_v21 = vpack.c.bf16 %v21_v20, %v21_v20  ;;  %s2167_s18 = smov 104   ;;  %s2168_s19 = smov 120   ;;  %vm1561_vm9 = vcmask 64544   ;;  %vm1688_vm10 = vcmask 130048   ;;  %vm1690_vm11 = vcmask 7168  }
   0x6   :  { %1827 = vmatprep.subr.bf16.mxu1 %v2155_v1  ;;  %1803 = vmatprep.subr.bf16.mxu0 %v2155_v1  ;;  %s2169_s20 = smov 88   ;;  %s2170_s21 = smov 96   ;;  %1689 = vst.msk [vmem:[%s2510_s5] sm:$0xff] %vm1688_vm10, %v2155_v1  ;;  %vm1696_vm12 = vcmask 39944   ;;  %vm1701_vm13 = vcmask 72744   ;;  %vm1703_vm14 = vcmask 80968  }
   0x7   :  { %2037 = vset.pattern.permute.xlu1 %v2163_v14  ;;  %2038 = vset.pattern.permute.xlu0 %v2163_v14  ;;  %v2285_v23 = vsel %vm639_vm4, %v22_v21, 0  ;;  %s2172_s29 = smov 4  }
   0x8   :  { %230 = vrot.lane.b32.xlu0 %v2213_v3, %s2159_s23  ;;  %410 = vrot.lane.b32.xlu1 %v2213_v3, %s2160_s24 }
   0x9   :  { %1804 = vmatpush3.bf16.msra.mxu0 %v32_v11 }
   0xa   :  { %1809 = vmatprep.subr.bf16.mxu0 %v2155_v1 }
   0xc   :  { %500 = vrot.lane.b32.xlu0 %v2213_v3, %s2161_s25  ;;  %590 = vrot.lane.b32.xlu1 %v2213_v3, %s2162_s26 }
   0xd   :  { %1806 = vmatmul.mubr.msk.bf16.vlgmr.msra.gmra.mrb[0].mxu0 %vm41_vm2, %v36_v13 }
   0xe   :  { %1810 = vmatpush3.bf16.msra.mxu0 %v2221_v5  ;;  %1811 = vmatprep.mubr.msk.bf16.mxu0 %vm2156_vm1, %v2155_v1 }
   0xf   :  { %1821 = vmatprep.subr.bf16.mxu0 %v2155_v1 }
  0x15   :  { %1812 = vmatmul.mubr.msk.bf16.vlgmr.msra.gmra.mrb[4].mxu0 %vm91_vm3, %v2213_v3 }
  0x16   :  { %1822 = vmatpush3.bf16.msra.mxu0 %v2221_v5  ;;  %1823 = vmatprep.mubr.msk.bf16.mxu0 %vm2156_vm1, %v2155_v1 }
  0x17   :  { %1833 = vmatprep.subr.bf16.mxu0 %v2155_v1 }
  0x76   :  { %v141_v15 = vpop.permute.xlu0 %140  ;;  %v321_v17 = vpop.permute.xlu1 %320 }
  0x77   :  { %1818 = vmatmul.mubr.msk.bf16.vlgmr.msra.gmra.mrb[0].mxu1 %vm91_vm3, %v141_v15 }
  0x78   :  { %1828 = vmatpush3.bf16.msra.mxu1 %v2221_v5  ;;  %1829 = vmatprep.mubr.msk.bf16.mxu1 %vm2156_vm1, %v2155_v1 }
  0x79   :  { %1839 = vmatprep.subr.bf16.mxu1 %v2155_v1 }
  0x7a   :  { %v231_v16 = vpop.permute.xlu0 %230  ;;  %v411_v18 = vpop.permute.xlu1 %410 }
  0x7e   :  { %v501_v19 = vpop.permute.xlu0 %500  ;;  %v591_v22 = vpop.permute.xlu1 %590 }
  0x7f   :  { %1830 = vmatmul.mubr.msk.bf16.vlgmr.msra.gmra.mrb[4].mxu1 %vm91_vm3, %v231_v16 }
  0x80   :  { %1840 = vmatpush3.bf16.msra.mxu1 %v2221_v5  ;;  %1841 = vmatprep.mubr.msk.bf16.mxu1 %vm2156_vm1, %v2155_v1 }
  0x81   :  { %1851 = vmatprep.subr.bf16.mxu1 %v2155_v1 }
  0x87   :  { %1842 = vmatmul.mubr.msk.bf16.vlgmr.msra.gmra.mrb[8].mxu1 %vm91_vm3, %v321_v17 }
  0x88   :  { %1852 = vmatpush3.bf16.msra.mxu1 %v2221_v5  ;;  %1853 = vmatprep.mubr.msk.bf16.mxu1 %vm2156_vm1, %v2155_v1 }
  0x89   :  { %1863 = vmatprep.subr.bf16.mxu1 %v2155_v1 }
  0x8f   :  { %1854 = vmatmul.mubr.msk.bf16.vlgmr.msra.gmra.mrb[12].mxu1 %vm91_vm3, %v411_v18 }
  0x90   :  { %1864 = vmatpush3.bf16.msra.mxu1 %v2221_v5  ;;  %1865 = vmatprep.mubr.msk.bf16.mxu1 %vm2156_vm1, %v2155_v1 }
  0x91   :  { %1875 = vmatprep.subr.bf16.mxu1 %v2155_v1 }
  0x97   :  { %1866 = vmatmul.mubr.msk.bf16.vlgmr.msra.gmra.mrb[16].mxu1 %vm91_vm3, %v501_v19 }
  0x98   :  { %1876 = vmatpush3.bf16.msra.mxu1 %v2221_v5  ;;  %1877 = vmatprep.mubr.msk.bf16.mxu1 %vm2156_vm1, %v2155_v1 }
  0x99   :  { %1881 = vmatprep.subr.bf16.mxu1 %v2155_v1 }
  0x9f   :  { %1878 = vmatmul.mubr.msk.bf16.vlgmr.msra.gmra.mrb[20].mxu1 %vm91_vm3, %v591_v22 }
  0xa0   :  { %1882 = vmatpush3.bf16.msra.mxu1 %v2285_v23  ;;  %1883 = vmatprep.mubr.msk.bf16.mxu1 %vm2156_vm1, %v2155_v1 }
  0xa1   :  { %1887 = vmatprep.subr.bf16.mxu1 %v2155_v1 }
  0xa7   :  { %1884 = vmatmul.mubr.bf16.vlgmr.msra.gmra.mrb[24].mxu1 %v2163_v14 }
  0xa8   :  { %1888 = vmatpush3.bf16.msra.mxu1 %v2285_v23  ;;  %1889 = vmatprep.mubr.msk.bf16.mxu1 %vm2156_vm1, %v2155_v1 }
  0xa9   :  { %1899 = vmatprep.subr.bf16.mxu1 %v2155_v1 }
  0xe0   :  { %v2296_v24 = vpop.f32.mrb[0].mxu0 }
  0xe1   :  { %v1807_v25 = vpop.f32.mrb[1].mxu0 }
  0xe2   :  { %v82_v26 = vpop.f32.mrb[2].mxu0 }
  0xe3   :  { %v1808_v27 = vpop.f32.mrb[3].mxu0 }
  0xe8   :  { %v133_v28 = vpop.f32.mrb[4].mxu0 }
  0xe9   :  { %v1813_v29 = vpop.f32.mrb[5].mxu0  ;;  %v134_v33 = vadd.f32 %v2301_v32, %v133_v28 }
  0xea   :  { %v136_v30 = vpop.f32.mrb[6].mxu0 }
  0xeb   :  { %v1814_v31 = vpop.f32.mrb[7].mxu0 }
 0x17a   :  { %v677_v34 = vpop.f32.mrb[24].mxu1 }
 0x17b   :  { %v683_v35 = vadd.f32 %v677_v34, %v134_v33  ;;  %v1885_v36 = vpop.f32.mrb[25].mxu1 }
 0x17c   :  { %v680_v37 = vpop.f32.mrb[26].mxu1 }
 0x17d   :  { %2039 = vtanh.f32 %v683_v35  ;;  %v1886_v38 = vpop.f32.mrb[27].mxu1  ;;  %v1724_v40 = vmul.f32 -1.442695, %v683_v35 }
 0x17f   :  { %2041 = vpow2.f32 %v1724_v40 }
 0x187   :  { %v2040_v39 = vpop.eup %2039 }
 0x188   :  { %693 = vrot.lane.b32.xlu0 %v2040_v39, %s2164_s15 }
 0x189   :  { %v2042_v41 = vpop.eup %2041 }
 0x18a   :  { %v687_v42 = vadd.f32 1.0, %v2042_v41 }
 0x18c   :  { %2043 = vrcp.f32 %v687_v42 }
 0x196   :  { %v2044_v43 = vpop.eup %2043 }
 0x197   :  { %v691_v46 = vmul.f32 0.0, %v2044_v43 }
 0x1fa   :  { %v694_v44 = vpop.permute.xlu0 %693 }
 0x1fb   :  { %v696_v45 = vmul.f32 %v2044_v43, %v694_v44 }
 0x1fd   :  { %698 = vrot.lane.b32.xlu1 %v696_v45, %s2165_s16 }
 0x26f   :  { %v699_v47 = vpop.permute.xlu1 %698 }
 0x270   :  { %v701_v48 = vadd.f32 %v699_v47, %v691_v46 }
 0x272   :  { %2045 = vtanh.f32 %v701_v48 }
 0x27c   :  { %v2046_v49 = vpop.eup %2045 }
 0x27d   :  { %704 = vrot.lane.b32.xlu0 %v2046_v49, %s2166_s17 }
 0x2ef   :  { %v705_v50 = vpop.permute.xlu0 %704 }
 0x2f0   :  { %v707_v51 = vmul.f32 %v2044_v43, %v705_v50 }
 0x2f2   :  { %v708_v52 = vpack.c.bf16 %v707_v51, %v707_v51 }
 0x2f4   :  { %710 = vrot.lane.b32.xlu1 %v708_v52, %s2167_s18 }
 0x366   :  { %v711_v53 = vpop.permute.xlu1 %710 }
 0x367   :  { %1890 = vmatmul.mubr.msk.bf16.vlgmr.msra.gmra.mrb[0].mxu1 %vm635_vm5, %v711_v53 }
 0x368   :  { %1900 = vmatpush3.bf16.msra.mxu1 %v2285_v23  ;;  %1901 = vmatprep.mubr.msk.bf16.mxu1 %vm2156_vm1, %v2155_v1 }
 0x369   :  { %1911 = vmatprep.subr.bf16.mxu1 %v2155_v1 }
 0x43a   :  { %v749_v54 = vpop.f32.mrb[0].mxu1 }
 0x43b   :  { %v1961_v55 = vadd.f32 %v2301_v32, %v749_v54  ;;  %v1891_v56 = vpop.f32.mrb[1].mxu1 }
 0x43c   :  { %v752_v57 = vpop.f32.mrb[2].mxu1 }
 0x43d   :  { %2047 = vtanh.f32 %v1961_v55  ;;  %v1892_v58 = vpop.f32.mrb[3].mxu1  ;;  %v1726_v60 = vmul.f32 -1.442695, %v1961_v55 }
 0x43f   :  { %2049 = vpow2.f32 %v1726_v60 }
 0x447   :  { %v2048_v59 = vpop.eup %2047 }
 0x448   :  { %765 = vrot.lane.b32.xlu0 %v2048_v59, %s2164_s15 }
 0x449   :  { %v2050_v61 = vpop.eup %2049 }
 0x44a   :  { %v759_v62 = vadd.f32 1.0, %v2050_v61 }
 0x44c   :  { %2051 = vrcp.f32 %v759_v62 }
 0x456   :  { %v2052_v63 = vpop.eup %2051 }
 0x457   :  { %v763_v4 = vmul.f32 %v2052_v63, %v701_v48 }
 0x4ba   :  { %v766_v0 = vpop.permute.xlu0 %765 }
 0x4bb   :  { %v768_v2 = vmul.f32 %v2052_v63, %v766_v0 }
 0x4bd   :  { %770 = vrot.lane.b32.xlu1 %v768_v2, %s2165_s16 }
 0x4c1   :  { %185 = vrot.lane.b32.xlu1 %v2213_v3, %s2168_s19 }
 0x4c5   :  { %365 = vrot.lane.b32.xlu1 %v2213_v3, %s2167_s18 }
 0x4c9   :  { %545 = vrot.lane.b32.xlu1 %v2213_v3, %s2169_s20 }
 0x52f   :  { %v771_v6 = vpop.permute.xlu1 %770 }
 0x530   :  { %v773_v7 = vadd.f32 %v771_v6, %v763_v4 }
 0x532   :  { %2053 = vtanh.f32 %v773_v7 }
 0x533   :  { %v186_v8 = vpop.permute.xlu1 %185 }
 0x534   :  { %1824 = vmatmul.mubr.msk.bf16.vlgmr.msra.gmra.mrb[8].mxu0 %vm91_vm3, %v186_v8 }
 0x535   :  { %1834 = vmatpush3.bf16.msra.mxu0 %v2221_v5  ;;  %1835 = vmatprep.mubr.msk.bf16.mxu0 %vm2156_vm1, %v2155_v1 }
 0x536   :  { %1845 = vmatprep.subr.bf16.mxu0 %v2155_v1 }
 0x537   :  { %v366_v14 = vpop.permute.xlu1 %365 }
 0x53b   :  { %v546_v15 = vpop.permute.xlu1 %545 }
 0x53c   :  { %v2054_v9 = vpop.eup %2053 }
 0x53d   :  { %776 = vrot.lane.b32.xlu0 %v2054_v9, %s2166_s17 }
 0x541   :  { %275 = vrot.lane.b32.xlu0 %v2213_v3, %s2164_s15 }
 0x545   :  { %455 = vrot.lane.b32.xlu0 %v2213_v3, %s2170_s21 }
 0x5af   :  { %v777_v10 = vpop.permute.xlu0 %776 }
 0x5b0   :  { %v779_v11 = vmul.f32 %v2052_v63, %v777_v10 }
 0x5b2   :  { %v780_v12 = vpack.c.bf16 %v779_v11, %v779_v11 }
 0x5b3   :  { %v276_v13 = vpop.permute.xlu0 %275 }
 0x5b4   :  { %782 = vrot.lane.b32.xlu0 %v780_v12, %s2167_s18  ;;  %1836 = vmatmul.mubr.msk.bf16.vlgmr.msra.gmra.mrb[12].mxu0 %vm91_vm3, %v276_v13 }
 0x5b5   :  { %1846 = vmatpush3.bf16.msra.mxu0 %v2221_v5  ;;  %1847 = vmatprep.mubr.msk.bf16.mxu0 %vm2156_vm1, %v2155_v1 }
 0x5b6   :  { %1857 = vmatprep.subr.bf16.mxu0 %v2155_v1 }
 0x5b7   :  { %v456_v3 = vpop.permute.xlu0 %455 }
 0x5bc   :  { %1848 = vmatmul.mubr.msk.bf16.vlgmr.msra.gmra.mrb[16].mxu0 %vm91_vm3, %v366_v14 }
 0x5bd   :  { %1858 = vmatpush3.bf16.msra.mxu0 %v2221_v5  ;;  %1859 = vmatprep.mubr.msk.bf16.mxu0 %vm2156_vm1, %v2155_v1 }
 0x5be   :  { %1869 = vmatprep.subr.bf16.mxu0 %v2155_v1 }
 0x5c4   :  { %1860 = vmatmul.mubr.msk.bf16.vlgmr.msra.gmra.mrb[20].mxu0 %vm91_vm3, %v456_v3 }
 0x5c5   :  { %1870 = vmatpush3.bf16.msra.mxu0 %v2221_v5  ;;  %1871 = vmatprep.mubr.msk.bf16.mxu0 %vm2156_vm1, %v2155_v1 }
 0x5c6   :  { %1893 = vmatprep.subr.bf16.mxu0 %v2155_v1 }
 0x5cc   :  { %1872 = vmatmul.mubr.msk.bf16.vlgmr.msra.gmra.mrb[24].mxu0 %vm91_vm3, %v546_v15 }
 0x5cd   :  { %1894 = vmatpush3.bf16.msra.mxu0 %v2285_v23  ;;  %1895 = vmatprep.mubr.msk.bf16.mxu0 %vm2156_vm1, %v2155_v1 }
 0x5ce   :  { %1905 = vmatprep.subr.bf16.mxu0 %v2155_v1 }
 0x626   :  { %v783_v16 = vpop.permute.xlu0 %782 }
 0x627   :  { %1896 = vmatmul.mubr.msk.bf16.vlgmr.msra.gmra.mrb[8].mxu0 %vm635_vm5, %v783_v16 }
 0x628   :  { %1906 = vmatpush3.bf16.msra.mxu0 %v2285_v23  ;;  %1907 = vmatprep.mubr.msk.bf16.mxu0 %vm2156_vm1, %v2155_v1 }
 0x629   :  { %1917 = vmatprep.subr.bf16.mxu0 %v2155_v1 }
 0x6fa   :  { %v821_v5 = vpop.f32.mrb[8].mxu0 }
 0x6fb   :  { %v1962_v17 = vadd.f32 %v2301_v32, %v821_v5  ;;  %v1897_v18 = vpop.f32.mrb[9].mxu0 }
 0x6fc   :  { %v824_v19 = vpop.f32.mrb[10].mxu0 }
 0x6fd   :  { %2055 = vtanh.f32 %v1962_v17  ;;  %v1898_v20 = vpop.f32.mrb[11].mxu0  ;;  %v1728_v22 = vmul.f32 -1.442695, %v1962_v17 }
 0x6ff   :  { %2057 = vpow2.f32 %v1728_v22 }
 0x707   :  { %v2056_v21 = vpop.eup %2055 }
 0x708   :  { %837 = vrot.lane.b32.xlu1 %v2056_v21, %s2164_s15 }
 0x709   :  { %v2058_v25 = vpop.eup %2057 }
 0x70a   :  { %v831_v26 = vadd.f32 1.0, %v2058_v25 }
 0x70c   :  { %2059 = vrcp.f32 %v831_v26 }
 0x716   :  { %v2060_v27 = vpop.eup %2059 }
 0x717   :  { %v835_v30 = vmul.f32 %v2060_v27, %v773_v7 }
 0x77a   :  { %v838_v28 = vpop.permute.xlu1 %837 }
 0x77b   :  { %v840_v29 = vmul.f32 %v2060_v27, %v838_v28 }
 0x77d   :  { %842 = vrot.lane.b32.xlu0 %v840_v29, %s2165_s16 }
 0x7ef   :  { %v843_v31 = vpop.permute.xlu0 %842 }
 0x7f0   :  { %v845_v33 = vadd.f32 %v843_v31, %v835_v30 }
 0x7f2   :  { %2061 = vtanh.f32 %v845_v33 }
 0x7fc   :  { %v2062_v34 = vpop.eup %2061 }
 0x7fd   :  { %848 = vrot.lane.b32.xlu1 %v2062_v34, %s2166_s17 }
 0x86f   :  { %v849_v35 = vpop.permute.xlu1 %848 }
 0x870   :  { %v851_v36 = vmul.f32 %v2060_v27, %v849_v35 }
 0x872   :  { %v852_v37 = vpack.c.bf16 %v851_v36, %v851_v36 }
 0x874   :  { %854 = vrot.lane.b32.xlu0 %v852_v37, %s2167_s18 }
 0x8e6   :  { %v855_v38 = vpop.permute.xlu0 %854 }
 0x8e7   :  { %1902 = vmatmul.mubr.msk.bf16.vlgmr.msra.gmra.mrb[4].mxu1 %vm635_vm5, %v855_v38 }
 0x8e8   :  { %1912 = vmatpush3.bf16.msra.mxu1 %v2285_v23  ;;  %1913 = vmatprep.mubr.msk.bf16.mxu1 %vm2156_vm1, %v2155_v1 }
 0x8e9   :  { %1923 = vmatprep.subr.bf16.mxu1 %v2155_v1 }
 0x9ba   :  { %v893_v39 = vpop.f32.mrb[4].mxu1 }
 0x9bb   :  { %v1963_v40 = vadd.f32 %v2301_v32, %v893_v39  ;;  %v1903_v41 = vpop.f32.mrb[5].mxu1 }
 0x9bc   :  { %v896_v42 = vpop.f32.mrb[6].mxu1 }
 0x9bd   :  { %2063 = vtanh.f32 %v1963_v40  ;;  %v1904_v43 = vpop.f32.mrb[7].mxu1  ;;  %v1730_v45 = vmul.f32 -1.442695, %v1963_v40 }
 0x9bf   :  { %2065 = vpow2.f32 %v1730_v45 }
 0x9c7   :  { %v2064_v44 = vpop.eup %2063 }
 0x9c8   :  { %909 = vrot.lane.b32.xlu1 %v2064_v44, %s2164_s15 }
 0x9c9   :  { %v2066_v46 = vpop.eup %2065 }
 0x9ca   :  { %v903_v47 = vadd.f32 1.0, %v2066_v46 }
 0x9cc   :  { %2067 = vrcp.f32 %v903_v47 }
 0x9d6   :  { %v2068_v48 = vpop.eup %2067 }
 0x9d7   :  { %v907_v51 = vmul.f32 %v2068_v48, %v845_v33 }
 0xa3a   :  { %v910_v49 = vpop.permute.xlu1 %909 }
 0xa3b   :  { %v912_v50 = vmul.f32 %v2068_v48, %v910_v49 }
 0xa3d   :  { %914 = vrot.lane.b32.xlu0 %v912_v50, %s2165_s16 }
 0xaaf   :  { %v915_v52 = vpop.permute.xlu0 %914 }
 0xab0   :  { %v917_v53 = vadd.f32 %v915_v52, %v907_v51 }
 0xab2   :  { %2069 = vtanh.f32 %v917_v53 }
 0xabc   :  { %v2070_v54 = vpop.eup %2069 }
 0xabd   :  { %920 = vrot.lane.b32.xlu1 %v2070_v54, %s2166_s17 }
 0xb2f   :  { %v921_v55 = vpop.permute.xlu1 %920 }
 0xb30   :  { %v923_v56 = vmul.f32 %v2068_v48, %v921_v55 }
 0xb32   :  { %v924_v57 = vpack.c.bf16 %v923_v56, %v923_v56 }
 0xb34   :  { %926 = vrot.lane.b32.xlu0 %v924_v57, %s2167_s18 }
 0xba6   :  { %v927_v58 = vpop.permute.xlu0 %926 }
 0xba7   :  { %1908 = vmatmul.mubr.msk.bf16.vlgmr.msra.gmra.mrb[12].mxu0 %vm635_vm5, %v927_v58 }
 0xba8   :  { %1918 = vmatpush3.bf16.msra.mxu0 %v2285_v23  ;;  %1919 = vmatprep.mubr.msk.bf16.mxu0 %vm2156_vm1, %v2155_v1 }
 0xba9   :  { %1929 = vmatprep.subr.bf16.mxu0 %v2155_v1 }
 0xc7a   :  { %v965_v59 = vpop.f32.mrb[12].mxu0 }
 0xc7b   :  { %v1964_v60 = vadd.f32 %v2301_v32, %v965_v59  ;;  %v1909_v61 = vpop.f32.mrb[13].mxu0 }
 0xc7c   :  { %v968_v62 = vpop.f32.mrb[14].mxu0 }
 0xc7d   :  { %2071 = vtanh.f32 %v1964_v60  ;;  %v1910_v63 = vpop.f32.mrb[15].mxu0  ;;  %v1732_v2 = vmul.f32 -1.442695, %v1964_v60 }
 0xc7f   :  { %2073 = vpow2.f32 %v1732_v2 }
 0xc87   :  { %v2072_v0 = vpop.eup %2071 }
 0xc88   :  { %981 = vrot.lane.b32.xlu1 %v2072_v0, %s2164_s15 }
 0xc89   :  { %v2074_v4 = vpop.eup %2073 }
 0xc8a   :  { %v975_v6 = vadd.f32 1.0, %v2074_v4 }
 0xc8c   :  { %2075 = vrcp.f32 %v975_v6 }
 0xc96   :  { %v2076_v7 = vpop.eup %2075 }
 0xc97   :  { %v979_v10 = vmul.f32 %v2076_v7, %v917_v53 }
 0xcfa   :  { %v982_v8 = vpop.permute.xlu1 %981 }
 0xcfb   :  { %v984_v9 = vmul.f32 %v2076_v7, %v982_v8 }
 0xcfd   :  { %986 = vrot.lane.b32.xlu0 %v984_v9, %s2165_s16 }
 0xd6f   :  { %v987_v11 = vpop.permute.xlu0 %986 }
 0xd70   :  { %v989_v12 = vadd.f32 %v987_v11, %v979_v10 }
 0xd72   :  { %2077 = vtanh.f32 %v989_v12 }
 0xd7c   :  { %v2078_v13 = vpop.eup %2077 }
 0xd7d   :  { %992 = vrot.lane.b32.xlu1 %v2078_v13, %s2166_s17 }
 0xdef   :  { %v993_v14 = vpop.permute.xlu1 %992 }
 0xdf0   :  { %v995_v3 = vmul.f32 %v2076_v7, %v993_v14 }
 0xdf2   :  { %v996_v15 = vpack.c.bf16 %v995_v3, %v995_v3 }
 0xdf4   :  { %998 = vrot.lane.b32.xlu0 %v996_v15, %s2167_s18 }
 0xe66   :  { %v999_v16 = vpop.permute.xlu0 %998 }
 0xe67   :  { %1914 = vmatmul.mubr.msk.bf16.vlgmr.msra.gmra.mrb[8].mxu1 %vm635_vm5, %v999_v16 }
 0xe68   :  { %1924 = vmatpush3.bf16.msra.mxu1 %v2285_v23  ;;  %1925 = vmatprep.mubr.msk.bf16.mxu1 %vm2156_vm1, %v2155_v1 }
 0xe69   :  { %1935 = vmatprep.subr.bf16.mxu1 %v2155_v1 }
 0xf3a   :  { %v1037_v5 = vpop.f32.mrb[8].mxu1 }
 0xf3b   :  { %v1965_v17 = vadd.f32 %v2301_v32, %v1037_v5  ;;  %v1915_v18 = vpop.f32.mrb[9].mxu1 }
 0xf3c   :  { %v1040_v19 = vpop.f32.mrb[10].mxu1 }
 0xf3d   :  { %2079 = vtanh.f32 %v1965_v17  ;;  %v1916_v20 = vpop.f32.mrb[11].mxu1  ;;  %v1734_v22 = vmul.f32 -1.442695, %v1965_v17 }
 0xf3f   :  { %2081 = vpow2.f32 %v1734_v22 }
 0xf47   :  { %v2080_v21 = vpop.eup %2079 }
 0xf48   :  { %1053 = vrot.lane.b32.xlu1 %v2080_v21, %s2164_s15 }
 0xf49   :  { %v2082_v25 = vpop.eup %2081 }
 0xf4a   :  { %v1047_v26 = vadd.f32 1.0, %v2082_v25 }
 0xf4c   :  { %2083 = vrcp.f32 %v1047_v26 }
 0xf56   :  { %v2084_v27 = vpop.eup %2083 }
 0xf57   :  { %v1051_v30 = vmul.f32 %v2084_v27, %v989_v12 }
 0xfba   :  { %v1054_v28 = vpop.permute.xlu1 %1053 }
 0xfbb   :  { %v1056_v29 = vmul.f32 %v2084_v27, %v1054_v28 }
 0xfbd   :  { %1058 = vrot.lane.b32.xlu0 %v1056_v29, %s2165_s16 }
0x102f   :  { %v1059_v31 = vpop.permute.xlu0 %1058 }
0x1030   :  { %v1061_v33 = vadd.f32 %v1059_v31, %v1051_v30 }
0x1032   :  { %2085 = vtanh.f32 %v1061_v33 }
0x103c   :  { %v2086_v34 = vpop.eup %2085 }
0x103d   :  { %1064 = vrot.lane.b32.xlu1 %v2086_v34, %s2166_s17 }
0x10af   :  { %v1065_v35 = vpop.permute.xlu1 %1064 }
0x10b0   :  { %v1067_v36 = vmul.f32 %v2084_v27, %v1065_v35 }
0x10b2   :  { %v1068_v37 = vpack.c.bf16 %v1067_v36, %v1067_v36 }
0x10b4   :  { %1070 = vrot.lane.b32.xlu0 %v1068_v37, %s2167_s18 }
0x1126   :  { %v1071_v38 = vpop.permute.xlu0 %1070 }
0x1127   :  { %1920 = vmatmul.mubr.msk.bf16.vlgmr.msra.gmra.mrb[16].mxu0 %vm635_vm5, %v1071_v38 }
0x1128   :  { %1930 = vmatpush3.bf16.msra.mxu0 %v2285_v23  ;;  %1931 = vmatprep.mubr.msk.bf16.mxu0 %vm2156_vm1, %v2155_v1 }
0x1129   :  { %1941 = vmatprep.subr.bf16.mxu0 %v2155_v1 }
0x11fa   :  { %v1109_v39 = vpop.f32.mrb[16].mxu0 }
0x11fb   :  { %v1966_v40 = vadd.f32 %v2301_v32, %v1109_v39  ;;  %v1921_v41 = vpop.f32.mrb[17].mxu0 }
0x11fc   :  { %v1112_v42 = vpop.f32.mrb[18].mxu0 }
0x11fd   :  { %2087 = vtanh.f32 %v1966_v40  ;;  %v1922_v43 = vpop.f32.mrb[19].mxu0  ;;  %v1736_v45 = vmul.f32 -1.442695, %v1966_v40 }
0x11ff   :  { %2089 = vpow2.f32 %v1736_v45 }
0x1207   :  { %v2088_v44 = vpop.eup %2087 }
0x1208   :  { %1125 = vrot.lane.b32.xlu1 %v2088_v44, %s2164_s15 }
0x1209   :  { %v2090_v46 = vpop.eup %2089 }
0x120a   :  { %v1119_v47 = vadd.f32 1.0, %v2090_v46 }
0x120c   :  { %2091 = vrcp.f32 %v1119_v47 }
0x1216   :  { %v2092_v48 = vpop.eup %2091 }
0x1217   :  { %v1123_v51 = vmul.f32 %v2092_v48, %v1061_v33 }
0x127a   :  { %v1126_v49 = vpop.permute.xlu1 %1125 }
0x127b   :  { %v1128_v50 = vmul.f32 %v2092_v48, %v1126_v49 }
0x127d   :  { %1130 = vrot.lane.b32.xlu0 %v1128_v50, %s2165_s16 }
0x12ef   :  { %v1131_v52 = vpop.permute.xlu0 %1130 }
0x12f0   :  { %v1133_v53 = vadd.f32 %v1131_v52, %v1123_v51 }
0x12f2   :  { %2093 = vtanh.f32 %v1133_v53 }
0x12fc   :  { %v2094_v54 = vpop.eup %2093 }
0x12fd   :  { %1136 = vrot.lane.b32.xlu1 %v2094_v54, %s2166_s17 }
0x136f   :  { %v1137_v55 = vpop.permute.xlu1 %1136 }
0x1370   :  { %v1139_v56 = vmul.f32 %v2092_v48, %v1137_v55 }
0x1372   :  { %v1140_v57 = vpack.c.bf16 %v1139_v56, %v1139_v56 }
0x1374   :  { %1142 = vrot.lane.b32.xlu0 %v1140_v57, %s2167_s18 }
0x13e6   :  { %v1143_v58 = vpop.permute.xlu0 %1142 }
0x13e7   :  { %1926 = vmatmul.mubr.msk.bf16.vlgmr.msra.gmra.mrb[12].mxu1 %vm635_vm5, %v1143_v58 }
0x13e8   :  { %1936 = vmatpush3.bf16.msra.mxu1 %v2285_v23  ;;  %1937 = vmatprep.mubr.msk.bf16.mxu1 %vm2156_vm1, %v2155_v1 }
0x13e9   :  { %1947 = vmatprep.subr.bf16.mxu1 %v2155_v1 }
0x14ba   :  { %v1181_v59 = vpop.f32.mrb[12].mxu1 }
0x14bb   :  { %v1967_v60 = vadd.f32 %v2301_v32, %v1181_v59  ;;  %v1927_v61 = vpop.f32.mrb[13].mxu1 }
0x14bc   :  { %v1184_v62 = vpop.f32.mrb[14].mxu1 }
0x14bd   :  { %2095 = vtanh.f32 %v1967_v60  ;;  %v1928_v63 = vpop.f32.mrb[15].mxu1  ;;  %v1738_v2 = vmul.f32 -1.442695, %v1967_v60 }
0x14bf   :  { %2097 = vpow2.f32 %v1738_v2 }
0x14c7   :  { %v2096_v0 = vpop.eup %2095 }
0x14c8   :  { %1197 = vrot.lane.b32.xlu1 %v2096_v0, %s2164_s15 }
0x14c9   :  { %v2098_v4 = vpop.eup %2097 }
0x14ca   :  { %v1191_v6 = vadd.f32 1.0, %v2098_v4 }
0x14cc   :  { %2099 = vrcp.f32 %v1191_v6 }
0x14d6   :  { %v2100_v7 = vpop.eup %2099 }
0x14d7   :  { %v1195_v10 = vmul.f32 %v2100_v7, %v1133_v53 }
0x153a   :  { %v1198_v8 = vpop.permute.xlu1 %1197 }
0x153b   :  { %v1200_v9 = vmul.f32 %v2100_v7, %v1198_v8 }
0x153d   :  { %1202 = vrot.lane.b32.xlu0 %v1200_v9, %s2165_s16 }
0x15af   :  { %v1203_v11 = vpop.permute.xlu0 %1202 }
0x15b0   :  { %v1205_v12 = vadd.f32 %v1203_v11, %v1195_v10 }
0x15b2   :  { %2101 = vtanh.f32 %v1205_v12 }
0x15bc   :  { %v2102_v13 = vpop.eup %2101 }
0x15bd   :  { %1208 = vrot.lane.b32.xlu1 %v2102_v13, %s2166_s17 }
0x162f   :  { %v1209_v14 = vpop.permute.xlu1 %1208 }
0x1630   :  { %v1211_v3 = vmul.f32 %v2100_v7, %v1209_v14 }
0x1632   :  { %v1212_v15 = vpack.c.bf16 %v1211_v3, %v1211_v3 }
0x1634   :  { %1214 = vrot.lane.b32.xlu0 %v1212_v15, %s2167_s18 }
0x16a6   :  { %v1215_v16 = vpop.permute.xlu0 %1214 }
0x16a7   :  { %1932 = vmatmul.mubr.msk.bf16.vlgmr.msra.gmra.mrb[20].mxu0 %vm635_vm5, %v1215_v16 }
0x16a8   :  { %1942 = vmatpush3.bf16.msra.mxu0 %v2285_v23  ;;  %1943 = vmatprep.mubr.msk.bf16.mxu0 %vm2156_vm1, %v2155_v1 }
0x16a9   :  { %1953 = vmatprep.subr.bf16.mxu0 %v2155_v1 }
0x177a   :  { %v1253_v5 = vpop.f32.mrb[20].mxu0 }
0x177b   :  { %v1968_v17 = vadd.f32 %v2301_v32, %v1253_v5  ;;  %v1933_v18 = vpop.f32.mrb[21].mxu0 }
0x177c   :  { %v1256_v19 = vpop.f32.mrb[22].mxu0 }
0x177d   :  { %2103 = vtanh.f32 %v1968_v17  ;;  %v1934_v20 = vpop.f32.mrb[23].mxu0  ;;  %v1740_v22 = vmul.f32 -1.442695, %v1968_v17 }
0x177f   :  { %2105 = vpow2.f32 %v1740_v22 }
0x1787   :  { %v2104_v21 = vpop.eup %2103 }
0x1788   :  { %1269 = vrot.lane.b32.xlu1 %v2104_v21, %s2164_s15  ;;  %v1585_v21 = vld [vmem:[%s2508_s2] sm:$0xff] }
0x1789   :  { %v2106_v25 = vpop.eup %2105 }
0x178a   :  { %v1263_v26 = vadd.f32 1.0, %v2106_v25 }
0x178c   :  { %2107 = vrcp.f32 %v1263_v26 }
0x1796   :  { %v2108_v27 = vpop.eup %2107 }
0x1797   :  { %v1267_v30 = vmul.f32 %v2108_v27, %v1205_v12 }
0x17fa   :  { %v1270_v28 = vpop.permute.xlu1 %1269 }
0x17fb   :  { %v1272_v29 = vmul.f32 %v2108_v27, %v1270_v28 }
0x17fd   :  { %1274 = vrot.lane.b32.xlu0 %v1272_v29, %s2165_s16  ;;  %v1709_v29 = vld [vmem:[%s2506_s4 + $0xd] ss:$0 sm:$0xff] }
0x186f   :  { %v1275_v31 = vpop.permute.xlu0 %1274 }
0x1870   :  { %v1277_v33 = vadd.f32 %v1275_v31, %v1267_v30  ;;  %v2448_v30 = vadd.f32 %v1709_v29, %v2296_v24 }
0x1872   :  { %2109 = vtanh.f32 %v1277_v33 }
0x187c   :  { %v2110_v34 = vpop.eup %2109 }
0x187d   :  { %1280 = vrot.lane.b32.xlu1 %v2110_v34, %s2166_s17 }
0x18ef   :  { %v1281_v35 = vpop.permute.xlu1 %1280 }
0x18f0   :  { %v1283_v36 = vmul.f32 %v2108_v27, %v1281_v35 }
0x18f2   :  { %v1284_v37 = vpack.c.bf16 %v1283_v36, %v1283_v36 }
0x18f4   :  { %1286 = vrot.lane.b32.xlu0 %v1284_v37, %s2167_s18 }
0x1966   :  { %v1287_v38 = vpop.permute.xlu0 %1286 }
0x1967   :  { %1938 = vmatmul.mubr.msk.bf16.vlgmr.msra.gmra.mrb[16].mxu1 %vm635_vm5, %v1287_v38 }
0x1968   :  { %1948 = vmatpush3.bf16.msra.mxu1 %v2285_v23  ;;  %1949 = vmatprep.mubr.msk.bf16.mxu1 %vm2156_vm1, %v2155_v1 }
0x1a3a   :  { %v1325_v39 = vpop.f32.mrb[16].mxu1 }
0x1a3b   :  { %v1969_v40 = vadd.f32 %v2301_v32, %v1325_v39  ;;  %v1939_v41 = vpop.f32.mrb[17].mxu1 }
0x1a3c   :  { %v1328_v42 = vpop.f32.mrb[18].mxu1 }
0x1a3d   :  { %2111 = vtanh.f32 %v1969_v40  ;;  %v1940_v43 = vpop.f32.mrb[19].mxu1  ;;  %v1742_v45 = vmul.f32 -1.442695, %v1969_v40  ;;  %v33_v40 = vld [vmem:[%s2506_s4 + $0x30] sm:$0xff] }
0x1a3e   :  { %v34_v24 = vpack.c.bf16 %v33_v40, %v33_v40 }
0x1a3f   :  { %2113 = vpow2.f32 %v1742_v45 }
0x1a40   :  { %v1508_v41 = vsel %vm639_vm4, %v34_v24, 0 }
0x1a47   :  { %v2112_v44 = vpop.eup %2111 }
0x1a48   :  { %1341 = vrot.lane.b32.xlu1 %v2112_v44, %s2164_s15 }
0x1a49   :  { %v2114_v46 = vpop.eup %2113 }
0x1a4a   :  { %v1335_v47 = vadd.f32 1.0, %v2114_v46 }
0x1a4c   :  { %2115 = vrcp.f32 %v1335_v47 }
0x1a56   :  { %v2116_v48 = vpop.eup %2115 }
0x1a57   :  { %v1339_v50 = vmul.f32 %v2116_v48, %v1277_v33 }
0x1aba   :  { %v1342_v23 = vpop.permute.xlu1 %1341 }
0x1abb   :  { %v1344_v49 = vmul.f32 %v2116_v48, %v1342_v23 }
0x1abd   :  { %1346 = vrot.lane.b32.xlu0 %v1344_v49, %s2165_s16 }
0x1b2f   :  { %v1347_v51 = vpop.permute.xlu0 %1346 }
0x1b30   :  { %v1349_v52 = vadd.f32 %v1347_v51, %v1339_v50 }
0x1b32   :  { %2117 = vtanh.f32 %v1349_v52 }
0x1b3c   :  { %v2118_v53 = vpop.eup %2117 }
0x1b3d   :  { %1352 = vrot.lane.b32.xlu1 %v2118_v53, %s2166_s17 }
0x1baf   :  { %v1353_v54 = vpop.permute.xlu1 %1352 }
0x1bb0   :  { %v1355_v55 = vmul.f32 %v2116_v48, %v1353_v54 }
0x1bb2   :  { %v1356_v56 = vpack.c.bf16 %v1355_v55, %v1355_v55 }
0x1bb4   :  { %1358 = vrot.lane.b32.xlu0 %v1356_v56, %s2167_s18 }
0x1c26   :  { %v1359_v57 = vpop.permute.xlu0 %1358 }
0x1c27   :  { %1944 = vmatmul.mubr.msk.bf16.vlgmr.msra.gmra.mrb[24].mxu0 %vm635_vm5, %v1359_v57 }
0x1c28   :  { %1955 = vmatprep.mubr.msk.bf16.mxu0 %vm2156_vm1, %v2155_v1  ;;  %1954 = vmatpush3.bf16.msra.mxu0 %v1508_v41 }
0x1cfa   :  { %v1397_v58 = vpop.f32.mrb[24].mxu0 }
0x1cfb   :  { %v1970_v59 = vadd.f32 %v2301_v32, %v1397_v58  ;;  %v1945_v60 = vpop.f32.mrb[25].mxu0 }
0x1cfc   :  { %v1400_v61 = vpop.f32.mrb[26].mxu0 }
0x1cfd   :  { %2119 = vtanh.f32 %v1970_v59  ;;  %v1946_v62 = vpop.f32.mrb[27].mxu0  ;;  %v1744_v0 = vmul.f32 -1.442695, %v1970_v59 }
0x1cff   :  { %2121 = vpow2.f32 %v1744_v0 }
0x1d07   :  { %v2120_v63 = vpop.eup %2119 }
0x1d08   :  { %1413 = vrot.lane.b32.xlu1 %v2120_v63, %s2164_s15 }
0x1d09   :  { %v2122_v2 = vpop.eup %2121 }
0x1d0a   :  { %v1407_v4 = vadd.f32 1.0, %v2122_v2 }
0x1d0c   :  { %2123 = vrcp.f32 %v1407_v4 }
0x1d16   :  { %v2124_v6 = vpop.eup %2123 }
0x1d17   :  { %v1411_v9 = vmul.f32 %v2124_v6, %v1349_v52 }
0x1d7a   :  { %v1414_v7 = vpop.permute.xlu1 %1413 }
0x1d7b   :  { %v1416_v8 = vmul.f32 %v2124_v6, %v1414_v7 }
0x1d7d   :  { %1418 = vrot.lane.b32.xlu0 %v1416_v8, %s2165_s16 }
0x1def   :  { %v1419_v10 = vpop.permute.xlu0 %1418 }
0x1df0   :  { %v1421_v11 = vadd.f32 %v1419_v10, %v1411_v9 }
0x1df2   :  { %2125 = vtanh.f32 %v1421_v11 }
0x1dfc   :  { %v2126_v12 = vpop.eup %2125 }
0x1dfd   :  { %1424 = vrot.lane.b32.xlu1 %v2126_v12, %s2166_s17 }
0x1e6f   :  { %v1425_v13 = vpop.permute.xlu1 %1424 }
0x1e70   :  { %v1427_v14 = vmul.f32 %v2124_v6, %v1425_v13 }
0x1e72   :  { %v1428_v3 = vpack.c.bf16 %v1427_v14, %v1427_v14  ;;  %v1555_v14 = vld [vmem:[%s2509_s3] sm:$0xff]  ;;  %s2173_s3 = smov 1  }
0x1e74   :  { %1430 = vrot.lane.b32.xlu0 %v1428_v3, %s2167_s18 }
0x1ee6   :  { %v1431_v15 = vpop.permute.xlu0 %1430 }
0x1ee7   :  { %1950 = vmatmul.mubr.msk.bf16.vlgmr.msra.gmra.mrb[20].mxu1 %vm635_vm5, %v1431_v15 }
0x1fba   :  { %v1469_v16 = vpop.f32.mrb[20].mxu1 }
0x1fbb   :  { %v1971_v5 = vadd.f32 %v2301_v32, %v1469_v16  ;;  %v1951_v17 = vpop.f32.mrb[21].mxu1 }
0x1fbc   :  { %v1472_v18 = vpop.f32.mrb[22].mxu1 }
0x1fbd   :  { %2127 = vtanh.f32 %v1971_v5  ;;  %v1952_v19 = vpop.f32.mrb[23].mxu1  ;;  %v1746_v22 = vmul.f32 -1.442695, %v1971_v5 }
0x1fbf   :  { %2129 = vpow2.f32 %v1746_v22 }
0x1fc7   :  { %v2128_v20 = vpop.eup %2127 }
0x1fc8   :  { %1485 = vrot.lane.b32.xlu1 %v2128_v20, %s2164_s15 }
0x1fc9   :  { %v2130_v25 = vpop.eup %2129 }
0x1fca   :  { %v1479_v26 = vadd.f32 1.0, %v2130_v25 }
0x1fcc   :  { %1588 = vperm.xlu1 %2037, %v1585_v21   ;;  %2131 = vrcp.f32 %v1479_v26 }
0x1fd6   :  { %v2132_v27 = vpop.eup %2131 }
0x1fd7   :  { %v1483_v36 = vmul.f32 %v2132_v27, %v1421_v11 }
0x203a   :  { %v1486_v28 = vpop.permute.xlu1 %1485 }
0x203b   :  { %v1488_v32 = vmul.f32 %v2132_v27, %v1486_v28 }
0x203d   :  { %1490 = vrot.lane.b32.xlu0 %v1488_v32, %s2165_s16 }
0x204b   :  { %v1589_v31 = vpop.permute.xlu1 %1588 }
0x204c   :  { %v1591_v33 = vsub.f32 %v2448_v30, %v1589_v31 }
0x204e   :  { %v1592_v34 = vmul.f32 %v1591_v33, %v1591_v33 }
0x2050   :  { %v1593_v35 = vsel %vm91_vm3, %v1592_v34, inf }
0x2051   :  { %1594 = vmin.xlane.f32.xlu1 %v1593_v35 }
0x20af   :  { %v1491_v37 = vpop.permute.xlu0 %1490 }
0x20b0   :  { %v1493_v38 = vadd.f32 %v1491_v37, %v1483_v36 }
0x20b2   :  { %2133 = vtanh.f32 %v1493_v38 }
0x20bc   :  { %v2134_v39 = vpop.eup %2133 }
0x20bd   :  { %1496 = vrot.lane.b32.xlu0 %v2134_v39, %s2166_s17 }
0x20de   :  { %v1595_v45 = vpop.xlane.xlu1 %1594 }
0x20df   :  { %v1596_v46 = vsub.f32 %v1592_v34, %v1595_v45 }
0x20e1   :  { %v1597_v47 = vadd.f32 1e-06, %v1596_v46 }
0x20e3   :  { %v1598_v48 = vsub.f32 0.0, %v1597_v47 }
0x20e5   :  { %vm1599_vm6 = vweird.f32 %v1598_v48 }
0x20e6   :  { %vm2458_vm8 = vmxor %vm1599_vm6, %vm2171_vm7 }
0x20e7   :  { %v1601_v49 = vsel %vm2458_vm8, %v1598_v48, -inf }
0x20e8   :  { %v1602_v50 = vsel %vm91_vm3, %v1601_v49, -inf }
0x212f   :  { %v1497_v42 = vpop.permute.xlu0 %1496 }
0x2130   :  { %v1499_v43 = vmul.f32 %v2132_v27, %v1497_v42 }
0x2132   :  { %v1500_v44 = vpack.c.bf16 %v1499_v43, %v1499_v43 }
0x2134   :  { %1502 = vrot.lane.b32.xlu0 %v1500_v44, %s2167_s18 }
0x2153   :  { %1603 = vmax.xlane.f32.xlu0 %v1602_v50 }
0x21a6   :  { %v1503_v51 = vpop.permute.xlu0 %1502 }
0x21a7   :  { %1956 = vmatmul.mubr.msk.bf16.vlgmr.msra.gmra.mrb[28].mxu0 %vm635_vm5, %v1503_v51 }
0x21e0   :  { %v1604_v52 = vpop.xlane.xlu0 %1603 }
0x21e1   :  { %v1605_v53 = vrot.slane %v1604_v52, 4 }
0x21e3   :  { %v1606_v54 = vmax.f32 %v1604_v52, %v1605_v53 }
0x21e5   :  { %v1607_v55 = vrot.slane %v1606_v54, 2 }
0x21e7   :  { %v1608_v56 = vmax.f32 %v1606_v54, %v1607_v55 }
0x21e9   :  { %v1609_v57 = vrot.slane %v1608_v56, 1 }
0x21eb   :  { %v1610_v58 = vmax.f32 %v1608_v56, %v1609_v57 }
0x21ed   :  { %2016 = vpush %v1610_v58 }
0x221e   :  { %s2017_s4 = spop %2016 }
0x221f   :  { %v1612_v59 = vstv %s2017_s4 }
0x2220   :  { %v1613_v60 = vsel %vm2458_vm8, %v1598_v48, %v1612_v59 }
0x2221   :  { %v1614_v61 = vmul.f32 100.0, %v1613_v60 }
0x2223   :  { %v1615_v62 = vmul.f32 1.442695, %v1614_v61 }
0x2225   :  { %2135 = vpow2.f32 %v1615_v62 }
0x222f   :  { %v2136_v63 = vpop.eup %2135 }
0x2230   :  { %v1617_v0 = vsel %vm91_vm3, %v2136_v63, 0.0 }
0x2231   :  { %v1618_v2 = vrot.slane %v1617_v0, 4 }
0x2233   :  { %v1619_v4 = vadd.f32 %v1618_v2, %v1617_v0 }
0x2235   :  { %v1620_v6 = vrot.slane %v1619_v4, 2 }
0x2237   :  { %v1621_v7 = vadd.f32 %v1620_v6, %v1619_v4 }
0x2239   :  { %v1622_v8 = vrot.slane %v1621_v7, 1 }
0x223b   :  { %v1623_v9 = vadd.f32 %v1622_v8, %v1621_v7 }
0x223d   :  { %v1624_v10 = vmax.f32 %v1623_v9, 1e-30 }
0x223f   :  { %2137 = vrcp.f32 %v1624_v10 }
0x2249   :  { %v2138_v11 = vpop.eup %2137 }
0x224a   :  { %v1626_v12 = vmul.f32 %v2138_v11, %v2136_v63 }
0x224c   :  { %v1627_v13 = vsel %vm91_vm3, %v1626_v12, 0.0 }
0x224d   :  { %1628 = vadd.xlane.f32.xlu1 %v1627_v13 }
0x225e   :  { %1557 = vrot.lane.b32.xlu1 %v1555_v14, %s2172_s29 }
0x227a   :  { %v1544_v3 = vpop.f32.mrb[28].mxu0 }
0x227b   :  { %1551 = vrot.lane.b32.xlu0 %v1544_v3, %s2172_s29  ;;  %v1957_v15 = vpop.f32.mrb[29].mxu0 }
0x227c   :  { %v1547_v16 = vpop.f32.mrb[30].mxu0 }
0x227d   :  { %v1958_v5 = vpop.f32.mrb[31].mxu0 }
0x22da   :  { %v1629_v17 = vpop.xlane.xlu1 %1628 }
0x22db   :  { %v1630_v18 = vmax.f32 %v1629_v17, 1e-30 }
0x22dd   :  { %2139 = vrcp.f32 %v1630_v18 }
0x22de   :  { %v1558_v26 = vpop.permute.xlu1 %1557 }
0x22e7   :  { %v2140_v19 = vpop.eup %2139 }
0x22e8   :  { %v1632_v20 = vmul.f32 %v2140_v19, %v1626_v12 }
0x22ea   :  { %v1633_v21 = vsel %vm91_vm3, %v1632_v20, 0.0 }
0x22eb   :  { %v1634_v22 = vrot.slane %v1633_v21, 4 }
0x22ed   :  { %v1552_v25 = vpop.permute.xlu0 %1551  ;;  %v1635_v27 = vadd.f32 %v1634_v22, %v1633_v21 }
0x22ee   :  { %v1554_v28 = vadd.f32 %v1552_v25, %v2448_v30 }
0x22ef   :  { %v1636_v32 = vrot.slane %v1635_v27, 2 }
0x22f0   :  { %v1560_v29 = vadd.f32 %v1558_v26, %v1554_v28 }
0x22f1   :  { %v1637_v31 = vadd.f32 %v1636_v32, %v1635_v27 }
0x22f2   :  { %v1562_v33 = vsel %vm1561_vm9, %v1560_v29, -inf }
0x22f3   :  { %1563 = vmax.xlane.f32.xlu0 %v1562_v33  ;;  %v1638_v34 = vrot.slane %v1637_v31, 1 }
0x22f5   :  { %v1639_v35 = vadd.f32 %v1638_v34, %v1637_v31 }
0x22f7   :  { %v1640_v36 = vmax.f32 %v1639_v35, 1e-30 }
0x22f9   :  { %2141 = vrcp.f32 %v1640_v36 }
0x2303   :  { %v2142_v37 = vpop.eup %2141 }
0x2304   :  { %v1642_v38 = vmul.f32 %v2142_v37, %v1632_v20 }
0x2306   :  { %v1643_v39 = vsel %vm91_vm3, %v1642_v38, 0.0 }
0x2307   :  { %1644 = vadd.xlane.f32.xlu1 %v1643_v39 }
0x2380   :  { %v1564_v40 = vpop.xlane.xlu0 %1563 }
0x2381   :  { %v1565_v24 = vsub.f32 %v1560_v29, %v1564_v40 }
0x2383   :  { %v1566_v41 = vmul.f32 1.442695, %v1565_v24 }
0x2385   :  { %2143 = vpow2.f32 %v1566_v41 }
0x238f   :  { %v2144_v42 = vpop.eup %2143 }
0x2390   :  { %1569 = vrot.lane.b32.xlu0 %v2144_v42, %s2157_s1 }
0x2394   :  { %v1645_v43 = vpop.xlane.xlu1 %1644 }
0x2395   :  { %v1646_v44 = vmax.f32 %v1645_v43, 1e-30 }
0x2397   :  { %2145 = vrcp.f32 %v1646_v44 }
0x23a1   :  { %v2146_v45 = vpop.eup %2145 }
0x23a2   :  { %v1648_v46 = vmul.f32 %v2146_v45, %v1642_v38 }
0x23a4   :  { %v1649_v47 = vsel %vm91_vm3, %v1648_v46, 0.0 }
0x23a5   :  { %v1650_v48 = vrot.slane %v1649_v47, 4 }
0x23a7   :  { %v1651_v23 = vadd.f32 %v1650_v48, %v1649_v47 }
0x23a9   :  { %v1652_v49 = vrot.slane %v1651_v23, 2 }
0x23ab   :  { %v1653_v50 = vadd.f32 %v1652_v49, %v1651_v23 }
0x23ad   :  { %v1654_v51 = vrot.slane %v1653_v50, 1 }
0x23af   :  { %v1655_v52 = vadd.f32 %v1654_v51, %v1653_v50 }
0x23b1   :  { %v1656_v53 = vmax.f32 %v1655_v52, 1e-30 }
0x23b3   :  { %2147 = vrcp.f32 %v1656_v53 }
0x23bd   :  { %v2148_v54 = vpop.eup %2147 }
0x23be   :  { %v1658_v55 = vmul.f32 %v2148_v54, %v1648_v46 }
0x23c0   :  { %v1659_v56 = vsel %vm91_vm3, %v1658_v55, 0.0 }
0x23c1   :  { %1660 = vadd.xlane.f32.xlu1 %v1659_v56 }
0x2402   :  { %v1570_v57 = vpop.permute.xlu0 %1569 }
0x2403   :  { %v1572_v58 = vsel %vm91_vm3, %v1570_v57, 0.0 }
0x2404   :  { %1573 = vadd.xlane.f32.xlu1 %v1572_v58 }
0x244e   :  { %v1661_v59 = vpop.xlane.xlu1 %1660 }
0x244f   :  { %v1662_v60 = vmax.f32 %v1661_v59, 1e-30 }
0x2451   :  { %2149 = vrcp.f32 %v1662_v60 }
0x245b   :  { %v2150_v61 = vpop.eup %2149 }
0x245c   :  { %v1664_v62 = vmul.f32 %v2150_v61, %v1658_v55 }
0x245e   :  { %1669 = vrot.lane.b32.xlu1 %v1664_v62, %s2172_s29 }
0x2491   :  { %v1574_v63 = vpop.xlane.xlu1 %1573 }
0x2492   :  { %2151 = vrcp.f32 %v1574_v63 }
0x249c   :  { %v2152_v0 = vpop.eup %2151 }
0x249d   :  { %v1576_v2 = vmul.f32 %v2152_v0, %v2144_v42 }
0x249f   :  { %v1665_v4 = vadd.f32 0.0001, %v1576_v2 }
0x24a1   :  { %2153 = vlog2.f32 %v1665_v4 }
0x24ab   :  { %v2154_v6 = vpop.eup %2153 }
0x24ac   :  { %v1667_v7 = vmul.f32 0.6931472, %v2154_v6 }
0x24d0   :  { %v1670_v8 = vpop.permute.xlu1 %1669 }
0x24d1   :  { %v1672_v9 = vmul.f32 %v1670_v8, %v1667_v7 }
0x24d3   :  { %1674 = vrot.lane.b32.xlu0 %v1672_v9, %s2157_s1 }
0x24d7   :  { %1578 = vrot.lane.b32.xlu0 %v1576_v2, %s2157_s1 }
0x2545   :  { %v1675_v10 = vpop.permute.xlu0 %1674 }
0x2546   :  { %v1677_v11 = vsel %vm91_vm3, %v1675_v10, 0.0 }
0x2547   :  { %1678 = vadd.xlane.f32.xlu1 %v1677_v11 }
0x2549   :  { %v1579_v12 = vpop.permute.xlu0 %1578 }
0x254a   :  { %v1581_v13 = vmul.f32 %v1579_v12, %v2448_v30 }
0x254c   :  { %v1582_v14 = vsel %vm91_vm3, %v1581_v13, 0.0 }
0x254d   :  { %1583 = vadd.xlane.f32.xlu0 %v1582_v14 }
0x2558   :  { %1698 = vrot.lane.b32.xlu1 %v1576_v2, %s2173_s3 }
0x2563   :  { %1693 = vrot.lane.b32.xlu0 %v2448_v30, %s2173_s3 }
0x25d4   :  { %v1679_v3 = vpop.xlane.xlu1 %1678 }
0x25d5   :  { %v1680_v15 = vrot.slane %v1679_v3, 4 }
0x25d7   :  { %v1681_v16 = vadd.f32 %v1680_v15, %v1679_v3 }
0x25d8   :  { %v1699_v22 = vpop.permute.xlu1 %1698 }
0x25d9   :  { %v1682_v5 = vrot.slane %v1681_v16, 2 }
0x25da   :  { %v1584_v17 = vpop.xlane.xlu0 %1583 }
0x25db   :  { %v1683_v18 = vadd.f32 %v1682_v5, %v1681_v16  ;;  %1691 = vst.msk [vmem:[%s2510_s5] sm:$0xff] %vm1690_vm11, %v1584_v17 }
0x25dd   :  { %v1684_v19 = vrot.slane %v1683_v18, 1 }
0x25de   :  { %v1694_v20 = vpop.permute.xlu0 %1693 }
0x25df   :  { %v1685_v21 = vadd.f32 %v1684_v19, %v1683_v18  ;;  %1697 = vst.msk [vmem:[%s2510_s5] sm:$0xff] %vm1696_vm12, %v1694_v20 }
0x25e0   :  { %1702 = vst.msk [vmem:[%s2510_s5] sm:$0xff] %vm1701_vm13, %v1699_v22 }
0x25e1   :  { %v1686_v1 = vmul.f32 0.125, %v1685_v21 }
0x25e3   :  { %v1687_v30 = vmul.f32 -0.01, %v1686_v1 }
0x25e5   :  { %1704 = vst.msk [vmem:[%s2510_s5] sm:$0xff] %vm1703_vm14, %v1687_v30 }

</bundles_post_ra>
